<compile_context>
chip_gen: v7x
topology: tpu7x:2x2x1
jax: 0.10.0
libtpu: 0.0.40
codegen_flags: <defaults>
</compile_context>

<pallas_src>
import functools

import jax
import jax.numpy as jnp
import numpy as np
from jax.experimental import pallas as pl
from jax.experimental.pallas import tpu as pltpu


# ----------------------------------------------------------------------------
# Pallas kernel
# ----------------------------------------------------------------------------
def _rnnsurv_kernel(
    x_ref,                         # (T*B, F)  time-major flattened input (f32)
    we0_ref, be0_ref,              # (F, E) bf16, (1, E) f32   embedding layer 0
    wf_ref, bf_ref,                # (E, 4H) bf16, (1, 4H) f32 fused we1@wih0 / bias
    wih1_ref,                      # (H, 4H) bf16              LSTM1 input proj
    whh0_ref, whh1_ref,            # (H, 4H) bf16 each         recurrent weights
    b1_ref,                        # (1, 4H) f32               LSTM1 bias
    wout_ref, bout_ref,            # (H, KP) bf16, (1, KP) f32 head (K padded to 128)
    probs_ref,                     # out: (T*B, KP) f32 lane-dense sigmoid probs
    *, B, T, H, fuse_rec,
):
    f32 = jnp.float32
    bf16 = jnp.bfloat16

    # ---- embedding layer 0 + ReLU, then fused (we1 @ wih0) projection ------
    # gx0 = relu(x@we0 + be0) @ (we1@wih0) + (be1@wih0 + b0)      (T*B, 4H)
    x = x_ref[...].astype(bf16)
    e = jnp.maximum(
        jnp.dot(x, we0_ref[...], preferred_element_type=f32) + be0_ref[...], 0.0)
    gx0 = jnp.dot(e.astype(bf16), wf_ref[...],
                  preferred_element_type=f32) + bf_ref[...]

    wih1 = wih1_ref[...]
    whh0 = whh0_ref[...]
    whh1 = whh1_ref[...]
    b1 = b1_ref[...]

    if fuse_rec:
        # block-diagonal (2H, 8H) recurrent weight: one 256-lane MXU pass per
        # step on v6e/v7x instead of two 128-lane passes (prologue-only cost).
        zero = jnp.zeros((H, 4 * H), bf16)
        whh_cat = jnp.concatenate(
            [jnp.concatenate([whh0, zero], axis=1),
             jnp.concatenate([zero, whh1], axis=1)], axis=0)     # (2H, 8H)

    def cell(g, c):
        # one sigmoid + one tanh over the full (B, 4H) tile, gates as lane slices
        sg = jax.nn.sigmoid(g)
        tg = jnp.tanh(g)
        i_g = sg[:, 0 * H:1 * H]
        f_g = sg[:, 1 * H:2 * H]
        g_g = tg[:, 2 * H:3 * H]
        o_g = sg[:, 3 * H:4 * H]
        c_new = f_g * c + i_g * g_g
        h_new = o_g * jnp.tanh(c_new)
        return h_new, c_new

    zeros = jnp.zeros((B, H), f32)
    h0, c0, h1, c1 = zeros, zeros, zeros, zeros
    hs = []                                    # top-layer hiddens, in registers

    # ---- 2-layer LSTM recurrence, fully unrolled, all state in registers ----
    for t in range(T):                         # T is a static Python int
        gx_t = gx0[t * B:(t + 1) * B, :]       # sublane-aligned (B padded to 8)
        if fuse_rec:
            hcat = jnp.concatenate([h0, h1], axis=1).astype(bf16)   # (B, 2H)
            rec = jnp.dot(hcat, whh_cat, preferred_element_type=f32)  # (B, 8H)
            g0 = gx_t + rec[:, :4 * H]
            h0, c0 = cell(g0, c0)
            g1 = (jnp.dot(h0.astype(bf16), wih1, preferred_element_type=f32)
                  + rec[:, 4 * H:] + b1)
        else:
            g0 = gx_t + jnp.dot(h0.astype(bf16), whh0,
                                preferred_element_type=f32)
            h0, c0 = cell(g0, c0)
            g1 = (jnp.dot(h0.astype(bf16), wih1, preferred_element_type=f32)
                  + jnp.dot(h1.astype(bf16), whh1, preferred_element_type=f32)
                  + b1)
        h1, c1 = cell(g1, c1)
        hs.append(h1)

    # ---- output head (lane-dense, K padded to 128) + sigmoid ---------------
    hid = jnp.concatenate(hs, axis=0).astype(bf16)              # (T*B, H)
    logits = jnp.dot(hid, wout_ref[...],
                     preferred_element_type=f32) + bout_ref[...]
    probs_ref[...] = jax.nn.sigmoid(logits)                     # full unmasked vst


# ----------------------------------------------------------------------------
# Wrapper
# ----------------------------------------------------------------------------
def _should_fuse_recurrent():
    # 256-lane fused recurrent pass helps on v6e/v7x (256-wide MXU); skip on v5.
    try:
        dk = jax.devices()[0].device_kind.lower()
    except Exception:
        return True
    return "v5" not in dk


@functools.partial(
    jax.jit,
    static_argnames=("hidden_size", "num_time_intervals", "fuse_recurrent"))
def rnnsurv_forward(x, params, *, hidden_size, num_time_intervals,
                    fuse_recurrent=True):
    """x: (B, T, F) float32, batch_first like the PyTorch module."""
    B, T, F = x.shape
    E = params["we0"].shape[1]
    H = hidden_size
    K = num_time_intervals
    KP = 128                                   # lane-dense padded head width
    Bp = max(8, ((B + 7) // 8) * 8)            # pad batch to a sublane multiple

    f32 = jnp.float32
    bf16 = jnp.bfloat16

    # zero-pad batch, then batch_first -> time-major flattened (row = t*Bp + b)
    x_pad = jnp.zeros((Bp, T, F), f32).at[:B].set(x)
    x_tm = jnp.transpose(x_pad, (1, 0, 2)).reshape(T * Bp, F)

    # fold we1 into wih0 (no nonlinearity between them); product in f32 -> bf16
    wfused = (params["we1"] @ params["wih0"]).astype(bf16)          # (E, 4H)
    bfused = params["be1"] @ params["wih0"] + params["b0"]          # (1, 4H) f32

    we0 = params["we0"].astype(bf16)
    wih1 = params["wih1"].astype(bf16)
    whh0 = params["whh0"].astype(bf16)
    whh1 = params["whh1"].astype(bf16)
    # pad the output head to 128 lanes so the probs store is lane-dense
    wout = jnp.zeros((H, KP), bf16).at[:, :K].set(params["wout"].astype(bf16))
    bout = jnp.zeros((1, KP), f32).at[:, :K].set(params["bout"])

    kern = functools.partial(_rnnsurv_kernel, B=Bp, T=T, H=H,
                             fuse_rec=fuse_recurrent)
    vmem = pl.BlockSpec(memory_space=pltpu.MemorySpace.VMEM)

    probs_full = pl.pallas_call(
        kern,
        out_shape=jax.ShapeDtypeStruct((T * Bp, KP), f32),
        in_specs=[vmem] * 11,
        out_specs=vmem,
    )(x_tm,
      we0, params["be0"], wfused, bfused,
      wih1, whh0, whh1, params["b1"],
      wout, bout)

    # (T*Bp, KP) time-major -> (B, T, K); padded rows / lanes sliced off here
    probs = probs_full.reshape(T, Bp, KP)[:, :B, :K].transpose(1, 0, 2)
    risk = jnp.sum(1.0 - probs[:, -1, :], axis=1, keepdims=True)
    return probs, risk


# ----------------------------------------------------------------------------
# Pure-JAX f32 reference (sanity check only)
# ----------------------------------------------------------------------------
def rnnsurv_reference(x, params, *, hidden_size, num_time_intervals):
    B, T, F = x.shape
    H = hidden_size
    e = jnp.maximum(x @ params["we0"] + params["be0"], 0.0)
    e = e @ params["we1"] + params["be1"]

    def lstm_layer(inp, wih, whh, b):
        def step(carry, x_t):
            h, c = carry
            g = x_t @ wih + h @ whh + b
            i = jax.nn.sigmoid(g[:, :H])
            f = jax.nn.sigmoid(g[:, H:2 * H])
            gg = jnp.tanh(g[:, 2 * H:3 * H])
            o = jax.nn.sigmoid(g[:, 3 * H:])
            c = f * c + i * gg
            h = o * jnp.tanh(c)
            return (h, c), h
        init = (jnp.zeros((B, H), jnp.float32), jnp.zeros((B, H), jnp.float32))
        _, hs = jax.lax.scan(step, init, jnp.transpose(inp, (1, 0, 2)))
        return jnp.transpose(hs, (1, 0, 2))

    o1 = lstm_layer(e, params["wih0"], params["whh0"], params["b0"])
    o2 = lstm_layer(o1, params["wih1"], params["whh1"], params["b1"])
    probs = jax.nn.sigmoid(o2 @ params["wout"] + params["bout"])
    risk = jnp.sum(1.0 - probs[:, -1, :], axis=1, keepdims=True)
    return probs, risk


# ----------------------------------------------------------------------------
# Main
# ----------------------------------------------------------------------------
if __name__ == "__main__":
    # Model config: RNNSurv(input_size=16, embedding_size=32,
    #                        num_embedding_layers=2, hidden_size=32,
    #                        num_recurrent_layers=2, num_time_intervals=8)
    B, T = 2, 8
    F, E, H, K = 16, 32, 32, 8

    key = jax.random.PRNGKey(0)
    ks = jax.random.split(key, 16)

    def w(k, shape, scale=0.1):
        return (scale * jax.random.normal(k, shape)).astype(jnp.float32)

    params = {
        # embedding layers (weights stored as (in, out))
        "we0": w(ks[0], (F, E)), "be0": w(ks[1], (1, E)),
        "we1": w(ks[2], (E, E)), "be1": w(ks[3], (1, E)),
        # LSTM layer 0 (b = b_ih + b_hh combined)
        "wih0": w(ks[4], (E, 4 * H)), "whh0": w(ks[5], (H, 4 * H)),
        "b0": w(ks[6], (1, 4 * H)),
        # LSTM layer 1
        "wih1": w(ks[7], (H, 4 * H)), "whh1": w(ks[8], (H, 4 * H)),
        "b1": w(ks[9], (1, 4 * H)),
        # output head
        "wout": w(ks[10], (H, K)), "bout": w(ks[11], (1, K)),
    }

    x = jax.random.normal(ks[12], (B, T, F), dtype=jnp.float32)

    fuse = _should_fuse_recurrent()
    probs, risk = rnnsurv_forward(x, params, hidden_size=H,
                                  num_time_intervals=K, fuse_recurrent=fuse)
    probs, risk = jax.block_until_ready((probs, risk))

    # sanity check vs. the f32 pure-JAX reference; kernel uses bf16 MXU
    # operands (f32 accumulation), so tolerance is relaxed accordingly.
    probs_ref, risk_ref = rnnsurv_reference(x, params, hidden_size=H,
                                            num_time_intervals=K)
    np.testing.assert_allclose(np.asarray(probs), np.asarray(probs_ref),
                               rtol=1e-2, atol=1e-2)
    np.testing.assert_allclose(np.asarray(risk), np.asarray(risk_ref),
                               rtol=1e-2, atol=1e-2)

    assert probs.shape == (B, T, K) and risk.shape == (B, 1)
    print("KERNEL_OK")
</pallas_src>

<mosaic_0001>
module attributes {stable_mosaic.version = 11 : i64} {
  func.func @_rnnsurv_kernel(%arg0: memref<64x16xf32, #tpu.memory_space<vmem>>, %arg1: memref<16x32xbf16, #tpu.memory_space<vmem>>, %arg2: memref<1x32xf32, #tpu.memory_space<vmem>>, %arg3: memref<32x128xbf16, #tpu.memory_space<vmem>>, %arg4: memref<1x128xf32, #tpu.memory_space<vmem>>, %arg5: memref<32x128xbf16, #tpu.memory_space<vmem>>, %arg6: memref<32x128xbf16, #tpu.memory_space<vmem>>, %arg7: memref<32x128xbf16, #tpu.memory_space<vmem>>, %arg8: memref<1x128xf32, #tpu.memory_space<vmem>>, %arg9: memref<32x128xbf16, #tpu.memory_space<vmem>>, %arg10: memref<1x128xf32, #tpu.memory_space<vmem>>, %arg11: memref<64x128xf32, #tpu.memory_space<vmem>>) attributes {dimension_semantics = [], scalar_prefetch = 0 : i64, scratch_operands = 0 : i64, tpu.core_type = #tpu.core_type<tc>} {
    %c0 = arith.constant 0 : index
    %c0_0 = arith.constant 0 : index
    %0 = vector.load %arg0[%c0, %c0_0] : memref<64x16xf32, #tpu.memory_space<vmem>>, vector<64x16xf32>
    %1 = arith.truncf %0 : vector<64x16xf32> to vector<64x16xbf16>
    %c0_1 = arith.constant 0 : index
    %c0_2 = arith.constant 0 : index
    %2 = vector.load %arg1[%c0_1, %c0_2] : memref<16x32xbf16, #tpu.memory_space<vmem>>, vector<16x32xbf16>
    %cst = arith.constant dense<0.000000e+00> : vector<64x32xf32>
    %3 = tpu.matmul %1, %2, %cst {dimension_numbers = #tpu.dot_dimension_numbers<[1], [0], [0], [1], [0, 0, 1, 1], [], []>} : vector<64x16xbf16>, vector<16x32xbf16>, vector<64x32xf32> -> vector<64x32xf32>
    %c0_3 = arith.constant 0 : index
    %c0_4 = arith.constant 0 : index
    %4 = vector.load %arg2[%c0_3, %c0_4] : memref<1x32xf32, #tpu.memory_space<vmem>>, vector<1x32xf32>
    %5 = vector.broadcast %4 : vector<1x32xf32> to vector<64x32xf32>
    %6 = arith.addf %3, %5 : vector<64x32xf32>
    %cst_5 = arith.constant 0.000000e+00 : f32
    %7 = vector.broadcast %cst_5 : f32 to vector<64x32xf32>
    %8 = arith.maximumf %6, %7 : vector<64x32xf32>
    %9 = arith.truncf %8 : vector<64x32xf32> to vector<64x32xbf16>
    %c0_6 = arith.constant 0 : index
    %c0_7 = arith.constant 0 : index
    %10 = vector.load %arg3[%c0_6, %c0_7] : memref<32x128xbf16, #tpu.memory_space<vmem>>, vector<32x128xbf16>
    %cst_8 = arith.constant dense<0.000000e+00> : vector<64x128xf32>
    %11 = tpu.matmul %9, %10, %cst_8 {dimension_numbers = #tpu.dot_dimension_numbers<[1], [0], [0], [1], [0, 0, 1, 1], [], []>} : vector<64x32xbf16>, vector<32x128xbf16>, vector<64x128xf32> -> vector<64x128xf32>
    %c0_9 = arith.constant 0 : index
    %c0_10 = arith.constant 0 : index
    %12 = vector.load %arg4[%c0_9, %c0_10] : memref<1x128xf32, #tpu.memory_space<vmem>>, vector<1x128xf32>
    %13 = vector.broadcast %12 : vector<1x128xf32> to vector<64x128xf32>
    %14 = arith.addf %11, %13 : vector<64x128xf32>
    %c0_11 = arith.constant 0 : index
    %c0_12 = arith.constant 0 : index
    %15 = vector.load %arg5[%c0_11, %c0_12] : memref<32x128xbf16, #tpu.memory_space<vmem>>, vector<32x128xbf16>
    %c0_13 = arith.constant 0 : index
    %c0_14 = arith.constant 0 : index
    %16 = vector.load %arg6[%c0_13, %c0_14] : memref<32x128xbf16, #tpu.memory_space<vmem>>, vector<32x128xbf16>
    %c0_15 = arith.constant 0 : index
    %c0_16 = arith.constant 0 : index
    %17 = vector.load %arg7[%c0_15, %c0_16] : memref<32x128xbf16, #tpu.memory_space<vmem>>, vector<32x128xbf16>
    %c0_17 = arith.constant 0 : index
    %c0_18 = arith.constant 0 : index
    %18 = vector.load %arg8[%c0_17, %c0_18] : memref<1x128xf32, #tpu.memory_space<vmem>>, vector<1x128xf32>
    %cst_19 = arith.constant 0.000000e+00 : bf16
    %19 = vector.broadcast %cst_19 : bf16 to vector<32x128xbf16>
    %20 = tpu.concatenate %16, %19 in 1 : vector<32x128xbf16>, vector<32x128xbf16> -> vector<32x256xbf16>
    %21 = tpu.concatenate %19, %17 in 1 : vector<32x128xbf16>, vector<32x128xbf16> -> vector<32x256xbf16>
    %22 = tpu.concatenate %20, %21 in 0 : vector<32x256xbf16>, vector<32x256xbf16> -> vector<64x256xbf16>
    %cst_20 = arith.constant 0.000000e+00 : f32
    %23 = vector.broadcast %cst_20 : f32 to vector<8x32xf32>
    %24 = vector.extract_strided_slice %14 {offsets = [0, 0], sizes = [8, 128], strides = [1, 1]} : vector<64x128xf32> to vector<8x128xf32>
    %25 = tpu.concatenate %23, %23 in 1 : vector<8x32xf32>, vector<8x32xf32> -> vector<8x64xf32>
    %26 = arith.truncf %25 : vector<8x64xf32> to vector<8x64xbf16>
    %cst_21 = arith.constant dense<0.000000e+00> : vector<8x256xf32>
    %27 = tpu.matmul %26, %22, %cst_21 {dimension_numbers = #tpu.dot_dimension_numbers<[1], [0], [0], [1], [0, 0, 1, 1], [], []>} : vector<8x64xbf16>, vector<64x256xbf16>, vector<8x256xf32> -> vector<8x256xf32>
    %28 = vector.extract_strided_slice %27 {offsets = [0, 0], sizes = [8, 128], strides = [1, 1]} : vector<8x256xf32> to vector<8x128xf32>
    %29 = arith.addf %24, %28 : vector<8x128xf32>
    %30 = arith.negf %29 : vector<8x128xf32>
    %31 = math.exp %30 : vector<8x128xf32>
    %cst_22 = arith.constant 1.000000e+00 : f32
    %32 = vector.broadcast %cst_22 : f32 to vector<8x128xf32>
    %33 = arith.addf %32, %31 : vector<8x128xf32>
    %34 = arith.divf %32, %33 : vector<8x128xf32>
    %35 = math.tanh %29 : vector<8x128xf32>
    %36 = vector.extract_strided_slice %34 {offsets = [0, 0], sizes = [8, 32], strides = [1, 1]} : vector<8x128xf32> to vector<8x32xf32>
    %37 = vector.extract_strided_slice %34 {offsets = [0, 32], sizes = [8, 32], strides = [1, 1]} : vector<8x128xf32> to vector<8x32xf32>
    %38 = vector.extract_strided_slice %35 {offsets = [0, 64], sizes = [8, 32], strides = [1, 1]} : vector<8x128xf32> to vector<8x32xf32>
    %39 = vector.extract_strided_slice %34 {offsets = [0, 96], sizes = [8, 32], strides = [1, 1]} : vector<8x128xf32> to vector<8x32xf32>
    %40 = arith.mulf %37, %23 : vector<8x32xf32>
    %41 = arith.mulf %36, %38 : vector<8x32xf32>
    %42 = arith.addf %40, %41 : vector<8x32xf32>
    %43 = math.tanh %42 : vector<8x32xf32>
    %44 = arith.mulf %39, %43 : vector<8x32xf32>
    %45 = arith.truncf %44 : vector<8x32xf32> to vector<8x32xbf16>
    %cst_23 = arith.constant dense<0.000000e+00> : vector<8x128xf32>
    %46 = tpu.matmul %45, %15, %cst_23 {dimension_numbers = #tpu.dot_dimension_numbers<[1], [0], [0], [1], [0, 0, 1, 1], [], []>} : vector<8x32xbf16>, vector<32x128xbf16>, vector<8x128xf32> -> vector<8x128xf32>
    %47 = vector.extract_strided_slice %27 {offsets = [0, 128], sizes = [8, 128], strides = [1, 1]} : vector<8x256xf32> to vector<8x128xf32>
    %48 = arith.addf %46, %47 : vector<8x128xf32>
    %49 = vector.broadcast %18 : vector<1x128xf32> to vector<8x128xf32>
    %50 = arith.addf %48, %49 : vector<8x128xf32>
    %51 = arith.negf %50 : vector<8x128xf32>
    %52 = math.exp %51 : vector<8x128xf32>
    %cst_24 = arith.constant 1.000000e+00 : f32
    %53 = vector.broadcast %cst_24 : f32 to vector<8x128xf32>
    %54 = arith.addf %53, %52 : vector<8x128xf32>
    %55 = arith.divf %53, %54 : vector<8x128xf32>
    %56 = math.tanh %50 : vector<8x128xf32>
    %57 = vector.extract_strided_slice %55 {offsets = [0, 0], sizes = [8, 32], strides = [1, 1]} : vector<8x128xf32> to vector<8x32xf32>
    %58 = vector.extract_strided_slice %55 {offsets = [0, 32], sizes = [8, 32], strides = [1, 1]} : vector<8x128xf32> to vector<8x32xf32>
    %59 = vector.extract_strided_slice %56 {offsets = [0, 64], sizes = [8, 32], strides = [1, 1]} : vector<8x128xf32> to vector<8x32xf32>
    %60 = vector.extract_strided_slice %55 {offsets = [0, 96], sizes = [8, 32], strides = [1, 1]} : vector<8x128xf32> to vector<8x32xf32>
    %61 = arith.mulf %58, %23 : vector<8x32xf32>
    %62 = arith.mulf %57, %59 : vector<8x32xf32>
    %63 = arith.addf %61, %62 : vector<8x32xf32>
    %64 = math.tanh %63 : vector<8x32xf32>
    %65 = arith.mulf %60, %64 : vector<8x32xf32>
    %66 = vector.extract_strided_slice %14 {offsets = [8, 0], sizes = [8, 128], strides = [1, 1]} : vector<64x128xf32> to vector<8x128xf32>
    %67 = tpu.concatenate %44, %65 in 1 : vector<8x32xf32>, vector<8x32xf32> -> vector<8x64xf32>
    %68 = arith.truncf %67 : vector<8x64xf32> to vector<8x64xbf16>
    %cst_25 = arith.constant dense<0.000000e+00> : vector<8x256xf32>
    %69 = tpu.matmul %68, %22, %cst_25 {dimension_numbers = #tpu.dot_dimension_numbers<[1], [0], [0], [1], [0, 0, 1, 1], [], []>} : vector<8x64xbf16>, vector<64x256xbf16>, vector<8x256xf32> -> vector<8x256xf32>
    %70 = vector.extract_strided_slice %69 {offsets = [0, 0], sizes = [8, 128], strides = [1, 1]} : vector<8x256xf32> to vector<8x128xf32>
    %71 = arith.addf %66, %70 : vector<8x128xf32>
    %72 = arith.negf %71 : vector<8x128xf32>
    %73 = math.exp %72 : vector<8x128xf32>
    %cst_26 = arith.constant 1.000000e+00 : f32
    %74 = vector.broadcast %cst_26 : f32 to vector<8x128xf32>
    %75 = arith.addf %74, %73 : vector<8x128xf32>
    %76 = arith.divf %74, %75 : vector<8x128xf32>
    %77 = math.tanh %71 : vector<8x128xf32>
    %78 = vector.extract_strided_slice %76 {offsets = [0, 0], sizes = [8, 32], strides = [1, 1]} : vector<8x128xf32> to vector<8x32xf32>
    %79 = vector.extract_strided_slice %76 {offsets = [0, 32], sizes = [8, 32], strides = [1, 1]} : vector<8x128xf32> to vector<8x32xf32>
    %80 = vector.extract_strided_slice %77 {offsets = [0, 64], sizes = [8, 32], strides = [1, 1]} : vector<8x128xf32> to vector<8x32xf32>
    %81 = vector.extract_strided_slice %76 {offsets = [0, 96], sizes = [8, 32], strides = [1, 1]} : vector<8x128xf32> to vector<8x32xf32>
    %82 = arith.mulf %79, %42 : vector<8x32xf32>
    %83 = arith.mulf %78, %80 : vector<8x32xf32>
    %84 = arith.addf %82, %83 : vector<8x32xf32>
    %85 = math.tanh %84 : vector<8x32xf32>
    %86 = arith.mulf %81, %85 : vector<8x32xf32>
    %87 = arith.truncf %86 : vector<8x32xf32> to vector<8x32xbf16>
    %cst_27 = arith.constant dense<0.000000e+00> : vector<8x128xf32>
    %88 = tpu.matmul %87, %15, %cst_27 {dimension_numbers = #tpu.dot_dimension_numbers<[1], [0], [0], [1], [0, 0, 1, 1], [], []>} : vector<8x32xbf16>, vector<32x128xbf16>, vector<8x128xf32> -> vector<8x128xf32>
    %89 = vector.extract_strided_slice %69 {offsets = [0, 128], sizes = [8, 128], strides = [1, 1]} : vector<8x256xf32> to vector<8x128xf32>
    %90 = arith.addf %88, %89 : vector<8x128xf32>
    %91 = vector.broadcast %18 : vector<1x128xf32> to vector<8x128xf32>
    %92 = arith.addf %90, %91 : vector<8x128xf32>
    %93 = arith.negf %92 : vector<8x128xf32>
    %94 = math.exp %93 : vector<8x128xf32>
    %cst_28 = arith.constant 1.000000e+00 : f32
    %95 = vector.broadcast %cst_28 : f32 to vector<8x128xf32>
    %96 = arith.addf %95, %94 : vector<8x128xf32>
    %97 = arith.divf %95, %96 : vector<8x128xf32>
    %98 = math.tanh %92 : vector<8x128xf32>
    %99 = vector.extract_strided_slice %97 {offsets = [0, 0], sizes = [8, 32], strides = [1, 1]} : vector<8x128xf32> to vector<8x32xf32>
    %100 = vector.extract_strided_slice %97 {offsets = [0, 32], sizes = [8, 32], strides = [1, 1]} : vector<8x128xf32> to vector<8x32xf32>
    %101 = vector.extract_strided_slice %98 {offsets = [0, 64], sizes = [8, 32], strides = [1, 1]} : vector<8x128xf32> to vector<8x32xf32>
    %102 = vector.extract_strided_slice %97 {offsets = [0, 96], sizes = [8, 32], strides = [1, 1]} : vector<8x128xf32> to vector<8x32xf32>
    %103 = arith.mulf %100, %63 : vector<8x32xf32>
    %104 = arith.mulf %99, %101 : vector<8x32xf32>
    %105 = arith.addf %103, %104 : vector<8x32xf32>
    %106 = math.tanh %105 : vector<8x32xf32>
    %107 = arith.mulf %102, %106 : vector<8x32xf32>
    %108 = vector.extract_strided_slice %14 {offsets = [16, 0], sizes = [8, 128], strides = [1, 1]} : vector<64x128xf32> to vector<8x128xf32>
    %109 = tpu.concatenate %86, %107 in 1 : vector<8x32xf32>, vector<8x32xf32> -> vector<8x64xf32>
    %110 = arith.truncf %109 : vector<8x64xf32> to vector<8x64xbf16>
    %cst_29 = arith.constant dense<0.000000e+00> : vector<8x256xf32>
    %111 = tpu.matmul %110, %22, %cst_29 {dimension_numbers = #tpu.dot_dimension_numbers<[1], [0], [0], [1], [0, 0, 1, 1], [], []>} : vector<8x64xbf16>, vector<64x256xbf16>, vector<8x256xf32> -> vector<8x256xf32>
    %112 = vector.extract_strided_slice %111 {offsets = [0, 0], sizes = [8, 128], strides = [1, 1]} : vector<8x256xf32> to vector<8x128xf32>
    %113 = arith.addf %108, %112 : vector<8x128xf32>
    %114 = arith.negf %113 : vector<8x128xf32>
    %115 = math.exp %114 : vector<8x128xf32>
    %cst_30 = arith.constant 1.000000e+00 : f32
    %116 = vector.broadcast %cst_30 : f32 to vector<8x128xf32>
    %117 = arith.addf %116, %115 : vector<8x128xf32>
    %118 = arith.divf %116, %117 : vector<8x128xf32>
    %119 = math.tanh %113 : vector<8x128xf32>
    %120 = vector.extract_strided_slice %118 {offsets = [0, 0], sizes = [8, 32], strides = [1, 1]} : vector<8x128xf32> to vector<8x32xf32>
    %121 = vector.extract_strided_slice %118 {offsets = [0, 32], sizes = [8, 32], strides = [1, 1]} : vector<8x128xf32> to vector<8x32xf32>
    %122 = vector.extract_strided_slice %119 {offsets = [0, 64], sizes = [8, 32], strides = [1, 1]} : vector<8x128xf32> to vector<8x32xf32>
    %123 = vector.extract_strided_slice %118 {offsets = [0, 96], sizes = [8, 32], strides = [1, 1]} : vector<8x128xf32> to vector<8x32xf32>
    %124 = arith.mulf %121, %84 : vector<8x32xf32>
    %125 = arith.mulf %120, %122 : vector<8x32xf32>
    %126 = arith.addf %124, %125 : vector<8x32xf32>
    %127 = math.tanh %126 : vector<8x32xf32>
    %128 = arith.mulf %123, %127 : vector<8x32xf32>
    %129 = arith.truncf %128 : vector<8x32xf32> to vector<8x32xbf16>
    %cst_31 = arith.constant dense<0.000000e+00> : vector<8x128xf32>
    %130 = tpu.matmul %129, %15, %cst_31 {dimension_numbers = #tpu.dot_dimension_numbers<[1], [0], [0], [1], [0, 0, 1, 1], [], []>} : vector<8x32xbf16>, vector<32x128xbf16>, vector<8x128xf32> -> vector<8x128xf32>
    %131 = vector.extract_strided_slice %111 {offsets = [0, 128], sizes = [8, 128], strides = [1, 1]} : vector<8x256xf32> to vector<8x128xf32>
    %132 = arith.addf %130, %131 : vector<8x128xf32>
    %133 = vector.broadcast %18 : vector<1x128xf32> to vector<8x128xf32>
    %134 = arith.addf %132, %133 : vector<8x128xf32>
    %135 = arith.negf %134 : vector<8x128xf32>
    %136 = math.exp %135 : vector<8x128xf32>
    %cst_32 = arith.constant 1.000000e+00 : f32
    %137 = vector.broadcast %cst_32 : f32 to vector<8x128xf32>
    %138 = arith.addf %137, %136 : vector<8x128xf32>
    %139 = arith.divf %137, %138 : vector<8x128xf32>
    %140 = math.tanh %134 : vector<8x128xf32>
    %141 = vector.extract_strided_slice %139 {offsets = [0, 0], sizes = [8, 32], strides = [1, 1]} : vector<8x128xf32> to vector<8x32xf32>
    %142 = vector.extract_strided_slice %139 {offsets = [0, 32], sizes = [8, 32], strides = [1, 1]} : vector<8x128xf32> to vector<8x32xf32>
    %143 = vector.extract_strided_slice %140 {offsets = [0, 64], sizes = [8, 32], strides = [1, 1]} : vector<8x128xf32> to vector<8x32xf32>
    %144 = vector.extract_strided_slice %139 {offsets = [0, 96], sizes = [8, 32], strides = [1, 1]} : vector<8x128xf32> to vector<8x32xf32>
    %145 = arith.mulf %142, %105 : vector<8x32xf32>
    %146 = arith.mulf %141, %143 : vector<8x32xf32>
    %147 = arith.addf %145, %146 : vector<8x32xf32>
    %148 = math.tanh %147 : vector<8x32xf32>
    %149 = arith.mulf %144, %148 : vector<8x32xf32>
    %150 = vector.extract_strided_slice %14 {offsets = [24, 0], sizes = [8, 128], strides = [1, 1]} : vector<64x128xf32> to vector<8x128xf32>
    %151 = tpu.concatenate %128, %149 in 1 : vector<8x32xf32>, vector<8x32xf32> -> vector<8x64xf32>
    %152 = arith.truncf %151 : vector<8x64xf32> to vector<8x64xbf16>
    %cst_33 = arith.constant dense<0.000000e+00> : vector<8x256xf32>
    %153 = tpu.matmul %152, %22, %cst_33 {dimension_numbers = #tpu.dot_dimension_numbers<[1], [0], [0], [1], [0, 0, 1, 1], [], []>} : vector<8x64xbf16>, vector<64x256xbf16>, vector<8x256xf32> -> vector<8x256xf32>
    %154 = vector.extract_strided_slice %153 {offsets = [0, 0], sizes = [8, 128], strides = [1, 1]} : vector<8x256xf32> to vector<8x128xf32>
    %155 = arith.addf %150, %154 : vector<8x128xf32>
    %156 = arith.negf %155 : vector<8x128xf32>
    %157 = math.exp %156 : vector<8x128xf32>
    %cst_34 = arith.constant 1.000000e+00 : f32
    %158 = vector.broadcast %cst_34 : f32 to vector<8x128xf32>
    %159 = arith.addf %158, %157 : vector<8x128xf32>
    %160 = arith.divf %158, %159 : vector<8x128xf32>
    %161 = math.tanh %155 : vector<8x128xf32>
    %162 = vector.extract_strided_slice %160 {offsets = [0, 0], sizes = [8, 32], strides = [1, 1]} : vector<8x128xf32> to vector<8x32xf32>
    %163 = vector.extract_strided_slice %160 {offsets = [0, 32], sizes = [8, 32], strides = [1, 1]} : vector<8x128xf32> to vector<8x32xf32>
    %164 = vector.extract_strided_slice %161 {offsets = [0, 64], sizes = [8, 32], strides = [1, 1]} : vector<8x128xf32> to vector<8x32xf32>
    %165 = vector.extract_strided_slice %160 {offsets = [0, 96], sizes = [8, 32], strides = [1, 1]} : vector<8x128xf32> to vector<8x32xf32>
    %166 = arith.mulf %163, %126 : vector<8x32xf32>
    %167 = arith.mulf %162, %164 : vector<8x32xf32>
    %168 = arith.addf %166, %167 : vector<8x32xf32>
    %169 = math.tanh %168 : vector<8x32xf32>
    %170 = arith.mulf %165, %169 : vector<8x32xf32>
    %171 = arith.truncf %170 : vector<8x32xf32> to vector<8x32xbf16>
    %cst_35 = arith.constant dense<0.000000e+00> : vector<8x128xf32>
    %172 = tpu.matmul %171, %15, %cst_35 {dimension_numbers = #tpu.dot_dimension_numbers<[1], [0], [0], [1], [0, 0, 1, 1], [], []>} : vector<8x32xbf16>, vector<32x128xbf16>, vector<8x128xf32> -> vector<8x128xf32>
    %173 = vector.extract_strided_slice %153 {offsets = [0, 128], sizes = [8, 128], strides = [1, 1]} : vector<8x256xf32> to vector<8x128xf32>
    %174 = arith.addf %172, %173 : vector<8x128xf32>
    %175 = vector.broadcast %18 : vector<1x128xf32> to vector<8x128xf32>
    %176 = arith.addf %174, %175 : vector<8x128xf32>
    %177 = arith.negf %176 : vector<8x128xf32>
    %178 = math.exp %177 : vector<8x128xf32>
    %cst_36 = arith.constant 1.000000e+00 : f32
    %179 = vector.broadcast %cst_36 : f32 to vector<8x128xf32>
    %180 = arith.addf %179, %178 : vector<8x128xf32>
    %181 = arith.divf %179, %180 : vector<8x128xf32>
    %182 = math.tanh %176 : vector<8x128xf32>
    %183 = vector.extract_strided_slice %181 {offsets = [0, 0], sizes = [8, 32], strides = [1, 1]} : vector<8x128xf32> to vector<8x32xf32>
    %184 = vector.extract_strided_slice %181 {offsets = [0, 32], sizes = [8, 32], strides = [1, 1]} : vector<8x128xf32> to vector<8x32xf32>
    %185 = vector.extract_strided_slice %182 {offsets = [0, 64], sizes = [8, 32], strides = [1, 1]} : vector<8x128xf32> to vector<8x32xf32>
    %186 = vector.extract_strided_slice %181 {offsets = [0, 96], sizes = [8, 32], strides = [1, 1]} : vector<8x128xf32> to vector<8x32xf32>
    %187 = arith.mulf %184, %147 : vector<8x32xf32>
    %188 = arith.mulf %183, %185 : vector<8x32xf32>
    %189 = arith.addf %187, %188 : vector<8x32xf32>
    %190 = math.tanh %189 : vector<8x32xf32>
    %191 = arith.mulf %186, %190 : vector<8x32xf32>
    %192 = vector.extract_strided_slice %14 {offsets = [32, 0], sizes = [8, 128], strides = [1, 1]} : vector<64x128xf32> to vector<8x128xf32>
    %193 = tpu.concatenate %170, %191 in 1 : vector<8x32xf32>, vector<8x32xf32> -> vector<8x64xf32>
    %194 = arith.truncf %193 : vector<8x64xf32> to vector<8x64xbf16>
    %cst_37 = arith.constant dense<0.000000e+00> : vector<8x256xf32>
    %195 = tpu.matmul %194, %22, %cst_37 {dimension_numbers = #tpu.dot_dimension_numbers<[1], [0], [0], [1], [0, 0, 1, 1], [], []>} : vector<8x64xbf16>, vector<64x256xbf16>, vector<8x256xf32> -> vector<8x256xf32>
    %196 = vector.extract_strided_slice %195 {offsets = [0, 0], sizes = [8, 128], strides = [1, 1]} : vector<8x256xf32> to vector<8x128xf32>
    %197 = arith.addf %192, %196 : vector<8x128xf32>
    %198 = arith.negf %197 : vector<8x128xf32>
    %199 = math.exp %198 : vector<8x128xf32>
    %cst_38 = arith.constant 1.000000e+00 : f32
    %200 = vector.broadcast %cst_38 : f32 to vector<8x128xf32>
    %201 = arith.addf %200, %199 : vector<8x128xf32>
    %202 = arith.divf %200, %201 : vector<8x128xf32>
    %203 = math.tanh %197 : vector<8x128xf32>
    %204 = vector.extract_strided_slice %202 {offsets = [0, 0], sizes = [8, 32], strides = [1, 1]} : vector<8x128xf32> to vector<8x32xf32>
    %205 = vector.extract_strided_slice %202 {offsets = [0, 32], sizes = [8, 32], strides = [1, 1]} : vector<8x128xf32> to vector<8x32xf32>
    %206 = vector.extract_strided_slice %203 {offsets = [0, 64], sizes = [8, 32], strides = [1, 1]} : vector<8x128xf32> to vector<8x32xf32>
    %207 = vector.extract_strided_slice %202 {offsets = [0, 96], sizes = [8, 32], strides = [1, 1]} : vector<8x128xf32> to vector<8x32xf32>
    %208 = arith.mulf %205, %168 : vector<8x32xf32>
    %209 = arith.mulf %204, %206 : vector<8x32xf32>
    %210 = arith.addf %208, %209 : vector<8x32xf32>
    %211 = math.tanh %210 : vector<8x32xf32>
    %212 = arith.mulf %207, %211 : vector<8x32xf32>
    %213 = arith.truncf %212 : vector<8x32xf32> to vector<8x32xbf16>
    %cst_39 = arith.constant dense<0.000000e+00> : vector<8x128xf32>
    %214 = tpu.matmul %213, %15, %cst_39 {dimension_numbers = #tpu.dot_dimension_numbers<[1], [0], [0], [1], [0, 0, 1, 1], [], []>} : vector<8x32xbf16>, vector<32x128xbf16>, vector<8x128xf32> -> vector<8x128xf32>
    %215 = vector.extract_strided_slice %195 {offsets = [0, 128], sizes = [8, 128], strides = [1, 1]} : vector<8x256xf32> to vector<8x128xf32>
    %216 = arith.addf %214, %215 : vector<8x128xf32>
    %217 = vector.broadcast %18 : vector<1x128xf32> to vector<8x128xf32>
    %218 = arith.addf %216, %217 : vector<8x128xf32>
    %219 = arith.negf %218 : vector<8x128xf32>
    %220 = math.exp %219 : vector<8x128xf32>
    %cst_40 = arith.constant 1.000000e+00 : f32
    %221 = vector.broadcast %cst_40 : f32 to vector<8x128xf32>
    %222 = arith.addf %221, %220 : vector<8x128xf32>
    %223 = arith.divf %221, %222 : vector<8x128xf32>
    %224 = math.tanh %218 : vector<8x128xf32>
    %225 = vector.extract_strided_slice %223 {offsets = [0, 0], sizes = [8, 32], strides = [1, 1]} : vector<8x128xf32> to vector<8x32xf32>
    %226 = vector.extract_strided_slice %223 {offsets = [0, 32], sizes = [8, 32], strides = [1, 1]} : vector<8x128xf32> to vector<8x32xf32>
    %227 = vector.extract_strided_slice %224 {offsets = [0, 64], sizes = [8, 32], strides = [1, 1]} : vector<8x128xf32> to vector<8x32xf32>
    %228 = vector.extract_strided_slice %223 {offsets = [0, 96], sizes = [8, 32], strides = [1, 1]} : vector<8x128xf32> to vector<8x32xf32>
    %229 = arith.mulf %226, %189 : vector<8x32xf32>
    %230 = arith.mulf %225, %227 : vector<8x32xf32>
    %231 = arith.addf %229, %230 : vector<8x32xf32>
    %232 = math.tanh %231 : vector<8x32xf32>
    %233 = arith.mulf %228, %232 : vector<8x32xf32>
    %234 = vector.extract_strided_slice %14 {offsets = [40, 0], sizes = [8, 128], strides = [1, 1]} : vector<64x128xf32> to vector<8x128xf32>
    %235 = tpu.concatenate %212, %233 in 1 : vector<8x32xf32>, vector<8x32xf32> -> vector<8x64xf32>
    %236 = arith.truncf %235 : vector<8x64xf32> to vector<8x64xbf16>
    %cst_41 = arith.constant dense<0.000000e+00> : vector<8x256xf32>
    %237 = tpu.matmul %236, %22, %cst_41 {dimension_numbers = #tpu.dot_dimension_numbers<[1], [0], [0], [1], [0, 0, 1, 1], [], []>} : vector<8x64xbf16>, vector<64x256xbf16>, vector<8x256xf32> -> vector<8x256xf32>
    %238 = vector.extract_strided_slice %237 {offsets = [0, 0], sizes = [8, 128], strides = [1, 1]} : vector<8x256xf32> to vector<8x128xf32>
    %239 = arith.addf %234, %238 : vector<8x128xf32>
    %240 = arith.negf %239 : vector<8x128xf32>
    %241 = math.exp %240 : vector<8x128xf32>
    %cst_42 = arith.constant 1.000000e+00 : f32
    %242 = vector.broadcast %cst_42 : f32 to vector<8x128xf32>
    %243 = arith.addf %242, %241 : vector<8x128xf32>
    %244 = arith.divf %242, %243 : vector<8x128xf32>
    %245 = math.tanh %239 : vector<8x128xf32>
    %246 = vector.extract_strided_slice %244 {offsets = [0, 0], sizes = [8, 32], strides = [1, 1]} : vector<8x128xf32> to vector<8x32xf32>
    %247 = vector.extract_strided_slice %244 {offsets = [0, 32], sizes = [8, 32], strides = [1, 1]} : vector<8x128xf32> to vector<8x32xf32>
    %248 = vector.extract_strided_slice %245 {offsets = [0, 64], sizes = [8, 32], strides = [1, 1]} : vector<8x128xf32> to vector<8x32xf32>
    %249 = vector.extract_strided_slice %244 {offsets = [0, 96], sizes = [8, 32], strides = [1, 1]} : vector<8x128xf32> to vector<8x32xf32>
    %250 = arith.mulf %247, %210 : vector<8x32xf32>
    %251 = arith.mulf %246, %248 : vector<8x32xf32>
    %252 = arith.addf %250, %251 : vector<8x32xf32>
    %253 = math.tanh %252 : vector<8x32xf32>
    %254 = arith.mulf %249, %253 : vector<8x32xf32>
    %255 = arith.truncf %254 : vector<8x32xf32> to vector<8x32xbf16>
    %cst_43 = arith.constant dense<0.000000e+00> : vector<8x128xf32>
    %256 = tpu.matmul %255, %15, %cst_43 {dimension_numbers = #tpu.dot_dimension_numbers<[1], [0], [0], [1], [0, 0, 1, 1], [], []>} : vector<8x32xbf16>, vector<32x128xbf16>, vector<8x128xf32> -> vector<8x128xf32>
    %257 = vector.extract_strided_slice %237 {offsets = [0, 128], sizes = [8, 128], strides = [1, 1]} : vector<8x256xf32> to vector<8x128xf32>
    %258 = arith.addf %256, %257 : vector<8x128xf32>
    %259 = vector.broadcast %18 : vector<1x128xf32> to vector<8x128xf32>
    %260 = arith.addf %258, %259 : vector<8x128xf32>
    %261 = arith.negf %260 : vector<8x128xf32>
    %262 = math.exp %261 : vector<8x128xf32>
    %cst_44 = arith.constant 1.000000e+00 : f32
    %263 = vector.broadcast %cst_44 : f32 to vector<8x128xf32>
    %264 = arith.addf %263, %262 : vector<8x128xf32>
    %265 = arith.divf %263, %264 : vector<8x128xf32>
    %266 = math.tanh %260 : vector<8x128xf32>
    %267 = vector.extract_strided_slice %265 {offsets = [0, 0], sizes = [8, 32], strides = [1, 1]} : vector<8x128xf32> to vector<8x32xf32>
    %268 = vector.extract_strided_slice %265 {offsets = [0, 32], sizes = [8, 32], strides = [1, 1]} : vector<8x128xf32> to vector<8x32xf32>
    %269 = vector.extract_strided_slice %266 {offsets = [0, 64], sizes = [8, 32], strides = [1, 1]} : vector<8x128xf32> to vector<8x32xf32>
    %270 = vector.extract_strided_slice %265 {offsets = [0, 96], sizes = [8, 32], strides = [1, 1]} : vector<8x128xf32> to vector<8x32xf32>
    %271 = arith.mulf %268, %231 : vector<8x32xf32>
    %272 = arith.mulf %267, %269 : vector<8x32xf32>
    %273 = arith.addf %271, %272 : vector<8x32xf32>
    %274 = math.tanh %273 : vector<8x32xf32>
    %275 = arith.mulf %270, %274 : vector<8x32xf32>
    %276 = vector.extract_strided_slice %14 {offsets = [48, 0], sizes = [8, 128], strides = [1, 1]} : vector<64x128xf32> to vector<8x128xf32>
    %277 = tpu.concatenate %254, %275 in 1 : vector<8x32xf32>, vector<8x32xf32> -> vector<8x64xf32>
    %278 = arith.truncf %277 : vector<8x64xf32> to vector<8x64xbf16>
    %cst_45 = arith.constant dense<0.000000e+00> : vector<8x256xf32>
    %279 = tpu.matmul %278, %22, %cst_45 {dimension_numbers = #tpu.dot_dimension_numbers<[1], [0], [0], [1], [0, 0, 1, 1], [], []>} : vector<8x64xbf16>, vector<64x256xbf16>, vector<8x256xf32> -> vector<8x256xf32>
    %280 = vector.extract_strided_slice %279 {offsets = [0, 0], sizes = [8, 128], strides = [1, 1]} : vector<8x256xf32> to vector<8x128xf32>
    %281 = arith.addf %276, %280 : vector<8x128xf32>
    %282 = arith.negf %281 : vector<8x128xf32>
    %283 = math.exp %282 : vector<8x128xf32>
    %cst_46 = arith.constant 1.000000e+00 : f32
    %284 = vector.broadcast %cst_46 : f32 to vector<8x128xf32>
    %285 = arith.addf %284, %283 : vector<8x128xf32>
    %286 = arith.divf %284, %285 : vector<8x128xf32>
    %287 = math.tanh %281 : vector<8x128xf32>
    %288 = vector.extract_strided_slice %286 {offsets = [0, 0], sizes = [8, 32], strides = [1, 1]} : vector<8x128xf32> to vector<8x32xf32>
    %289 = vector.extract_strided_slice %286 {offsets = [0, 32], sizes = [8, 32], strides = [1, 1]} : vector<8x128xf32> to vector<8x32xf32>
    %290 = vector.extract_strided_slice %287 {offsets = [0, 64], sizes = [8, 32], strides = [1, 1]} : vector<8x128xf32> to vector<8x32xf32>
    %291 = vector.extract_strided_slice %286 {offsets = [0, 96], sizes = [8, 32], strides = [1, 1]} : vector<8x128xf32> to vector<8x32xf32>
    %292 = arith.mulf %289, %252 : vector<8x32xf32>
    %293 = arith.mulf %288, %290 : vector<8x32xf32>
    %294 = arith.addf %292, %293 : vector<8x32xf32>
    %295 = math.tanh %294 : vector<8x32xf32>
    %296 = arith.mulf %291, %295 : vector<8x32xf32>
    %297 = arith.truncf %296 : vector<8x32xf32> to vector<8x32xbf16>
    %cst_47 = arith.constant dense<0.000000e+00> : vector<8x128xf32>
    %298 = tpu.matmul %297, %15, %cst_47 {dimension_numbers = #tpu.dot_dimension_numbers<[1], [0], [0], [1], [0, 0, 1, 1], [], []>} : vector<8x32xbf16>, vector<32x128xbf16>, vector<8x128xf32> -> vector<8x128xf32>
    %299 = vector.extract_strided_slice %279 {offsets = [0, 128], sizes = [8, 128], strides = [1, 1]} : vector<8x256xf32> to vector<8x128xf32>
    %300 = arith.addf %298, %299 : vector<8x128xf32>
    %301 = vector.broadcast %18 : vector<1x128xf32> to vector<8x128xf32>
    %302 = arith.addf %300, %301 : vector<8x128xf32>
    %303 = arith.negf %302 : vector<8x128xf32>
    %304 = math.exp %303 : vector<8x128xf32>
    %cst_48 = arith.constant 1.000000e+00 : f32
    %305 = vector.broadcast %cst_48 : f32 to vector<8x128xf32>
    %306 = arith.addf %305, %304 : vector<8x128xf32>
    %307 = arith.divf %305, %306 : vector<8x128xf32>
    %308 = math.tanh %302 : vector<8x128xf32>
    %309 = vector.extract_strided_slice %307 {offsets = [0, 0], sizes = [8, 32], strides = [1, 1]} : vector<8x128xf32> to vector<8x32xf32>
    %310 = vector.extract_strided_slice %307 {offsets = [0, 32], sizes = [8, 32], strides = [1, 1]} : vector<8x128xf32> to vector<8x32xf32>
    %311 = vector.extract_strided_slice %308 {offsets = [0, 64], sizes = [8, 32], strides = [1, 1]} : vector<8x128xf32> to vector<8x32xf32>
    %312 = vector.extract_strided_slice %307 {offsets = [0, 96], sizes = [8, 32], strides = [1, 1]} : vector<8x128xf32> to vector<8x32xf32>
    %313 = arith.mulf %310, %273 : vector<8x32xf32>
    %314 = arith.mulf %309, %311 : vector<8x32xf32>
    %315 = arith.addf %313, %314 : vector<8x32xf32>
    %316 = math.tanh %315 : vector<8x32xf32>
    %317 = arith.mulf %312, %316 : vector<8x32xf32>
    %318 = vector.extract_strided_slice %14 {offsets = [56, 0], sizes = [8, 128], strides = [1, 1]} : vector<64x128xf32> to vector<8x128xf32>
    %319 = tpu.concatenate %296, %317 in 1 : vector<8x32xf32>, vector<8x32xf32> -> vector<8x64xf32>
    %320 = arith.truncf %319 : vector<8x64xf32> to vector<8x64xbf16>
    %cst_49 = arith.constant dense<0.000000e+00> : vector<8x256xf32>
    %321 = tpu.matmul %320, %22, %cst_49 {dimension_numbers = #tpu.dot_dimension_numbers<[1], [0], [0], [1], [0, 0, 1, 1], [], []>} : vector<8x64xbf16>, vector<64x256xbf16>, vector<8x256xf32> -> vector<8x256xf32>
    %322 = vector.extract_strided_slice %321 {offsets = [0, 0], sizes = [8, 128], strides = [1, 1]} : vector<8x256xf32> to vector<8x128xf32>
    %323 = arith.addf %318, %322 : vector<8x128xf32>
    %324 = arith.negf %323 : vector<8x128xf32>
    %325 = math.exp %324 : vector<8x128xf32>
    %cst_50 = arith.constant 1.000000e+00 : f32
    %326 = vector.broadcast %cst_50 : f32 to vector<8x128xf32>
    %327 = arith.addf %326, %325 : vector<8x128xf32>
    %328 = arith.divf %326, %327 : vector<8x128xf32>
    %329 = math.tanh %323 : vector<8x128xf32>
    %330 = vector.extract_strided_slice %328 {offsets = [0, 0], sizes = [8, 32], strides = [1, 1]} : vector<8x128xf32> to vector<8x32xf32>
    %331 = vector.extract_strided_slice %328 {offsets = [0, 32], sizes = [8, 32], strides = [1, 1]} : vector<8x128xf32> to vector<8x32xf32>
    %332 = vector.extract_strided_slice %329 {offsets = [0, 64], sizes = [8, 32], strides = [1, 1]} : vector<8x128xf32> to vector<8x32xf32>
    %333 = vector.extract_strided_slice %328 {offsets = [0, 96], sizes = [8, 32], strides = [1, 1]} : vector<8x128xf32> to vector<8x32xf32>
    %334 = arith.mulf %331, %294 : vector<8x32xf32>
    %335 = arith.mulf %330, %332 : vector<8x32xf32>
    %336 = arith.addf %334, %335 : vector<8x32xf32>
    %337 = math.tanh %336 : vector<8x32xf32>
    %338 = arith.mulf %333, %337 : vector<8x32xf32>
    %339 = arith.truncf %338 : vector<8x32xf32> to vector<8x32xbf16>
    %cst_51 = arith.constant dense<0.000000e+00> : vector<8x128xf32>
    %340 = tpu.matmul %339, %15, %cst_51 {dimension_numbers = #tpu.dot_dimension_numbers<[1], [0], [0], [1], [0, 0, 1, 1], [], []>} : vector<8x32xbf16>, vector<32x128xbf16>, vector<8x128xf32> -> vector<8x128xf32>
    %341 = vector.extract_strided_slice %321 {offsets = [0, 128], sizes = [8, 128], strides = [1, 1]} : vector<8x256xf32> to vector<8x128xf32>
    %342 = arith.addf %340, %341 : vector<8x128xf32>
    %343 = vector.broadcast %18 : vector<1x128xf32> to vector<8x128xf32>
    %344 = arith.addf %342, %343 : vector<8x128xf32>
    %345 = arith.negf %344 : vector<8x128xf32>
    %346 = math.exp %345 : vector<8x128xf32>
    %cst_52 = arith.constant 1.000000e+00 : f32
    %347 = vector.broadcast %cst_52 : f32 to vector<8x128xf32>
    %348 = arith.addf %347, %346 : vector<8x128xf32>
    %349 = arith.divf %347, %348 : vector<8x128xf32>
    %350 = math.tanh %344 : vector<8x128xf32>
    %351 = vector.extract_strided_slice %349 {offsets = [0, 0], sizes = [8, 32], strides = [1, 1]} : vector<8x128xf32> to vector<8x32xf32>
    %352 = vector.extract_strided_slice %349 {offsets = [0, 32], sizes = [8, 32], strides = [1, 1]} : vector<8x128xf32> to vector<8x32xf32>
    %353 = vector.extract_strided_slice %350 {offsets = [0, 64], sizes = [8, 32], strides = [1, 1]} : vector<8x128xf32> to vector<8x32xf32>
    %354 = vector.extract_strided_slice %349 {offsets = [0, 96], sizes = [8, 32], strides = [1, 1]} : vector<8x128xf32> to vector<8x32xf32>
    %355 = arith.mulf %352, %315 : vector<8x32xf32>
    %356 = arith.mulf %351, %353 : vector<8x32xf32>
    %357 = arith.addf %355, %356 : vector<8x32xf32>
    %358 = math.tanh %357 : vector<8x32xf32>
    %359 = arith.mulf %354, %358 : vector<8x32xf32>
    %360 = tpu.concatenate %65, %107, %149, %191, %233, %275, %317, %359 in 0 : vector<8x32xf32>, vector<8x32xf32>, vector<8x32xf32>, vector<8x32xf32>, vector<8x32xf32>, vector<8x32xf32>, vector<8x32xf32>, vector<8x32xf32> -> vector<64x32xf32>
    %361 = arith.truncf %360 : vector<64x32xf32> to vector<64x32xbf16>
    %c0_53 = arith.constant 0 : index
    %c0_54 = arith.constant 0 : index
    %362 = vector.load %arg9[%c0_53, %c0_54] : memref<32x128xbf16, #tpu.memory_space<vmem>>, vector<32x128xbf16>
    %cst_55 = arith.constant dense<0.000000e+00> : vector<64x128xf32>
    %363 = tpu.matmul %361, %362, %cst_55 {dimension_numbers = #tpu.dot_dimension_numbers<[1], [0], [0], [1], [0, 0, 1, 1], [], []>} : vector<64x32xbf16>, vector<32x128xbf16>, vector<64x128xf32> -> vector<64x128xf32>
    %c0_56 = arith.constant 0 : index
    %c0_57 = arith.constant 0 : index
    %364 = vector.load %arg10[%c0_56, %c0_57] : memref<1x128xf32, #tpu.memory_space<vmem>>, vector<1x128xf32>
    %365 = vector.broadcast %364 : vector<1x128xf32> to vector<64x128xf32>
    %366 = arith.addf %363, %365 : vector<64x128xf32>
    %367 = arith.negf %366 : vector<64x128xf32>
    %368 = math.exp %367 : vector<64x128xf32>
    %cst_58 = arith.constant 1.000000e+00 : f32
    %369 = vector.broadcast %cst_58 : f32 to vector<64x128xf32>
    %370 = arith.addf %369, %368 : vector<64x128xf32>
    %371 = arith.divf %369, %370 : vector<64x128xf32>
    %c0_59 = arith.constant 0 : index
    %c0_60 = arith.constant 0 : index
    %372 = vector.load %arg11[%c0_59, %c0_60] : memref<64x128xf32, #tpu.memory_space<vmem>>, vector<64x128xf32>
    tpu.vector_store %arg11[%c0_59, %c0_60], %371 {strides = array<i32>} : memref<64x128xf32, #tpu.memory_space<vmem>>, vector<64x128xf32>,
    return
  }
}

</mosaic_0001>

<bundles_post_ra>
// kernel: rnnsurv_forward.1
= control target key start
LH: loop header
LB: loop body
LE: loop exit
PB: predicated region body
PF: predicated region fallthrough
CT: control target
= control target key end

     0   :  { %vm66_vm0 = vcmask 130048   ;;  %v2075_v10 = vmov 0   ;;  %v2076_v20 = vmov 0.0|0.0   ;;  %vm179_vm1 = vcmask 261120   ;;  %s2078_s27 = smov 32   ;;  %s2608_s1 = inlined_call_operand.vmem [shape: bf16[16,32], index: 1, kind: input, shape index: {}]   ;;  %s2609_s0 = inlined_call_operand.vmem [shape: f32[64,16], index: 0, kind: input, shape index: {}]   ;;  %s2610_s6 = inlined_call_operand.vmem [shape: bf16[32,128], index: 6, kind: input, shape index: {}]   ;;  %s2611_s3 = inlined_call_operand.vmem [shape: bf16[32,128], index: 3, kind: input, shape index: {}]   ;;  %s2612_s7 = inlined_call_operand.vmem [shape: bf16[32,128], index: 7, kind: input, shape index: {}]   ;;  %s2613_s2 = inlined_call_operand.vmem [shape: f32[1,32], index: 2, kind: input, shape index: {}]   ;;  %s2614_s4 = inlined_call_operand.vmem [shape: f32[1,128], index: 4, kind: input, shape index: {}]   ;;  %s2615_s5 = inlined_call_operand.vmem [shape: bf16[32,128], index: 5, kind: input, shape index: {}]   ;;  %s2616_s8 = inlined_call_operand.vmem [shape: f32[1,128], index: 8, kind: input, shape index: {}]   ;;  %s2617_s9 = inlined_call_operand.vmem [shape: bf16[32,128], index: 9, kind: input, shape index: {}]   ;;  %s2618_s10 = inlined_call_operand.vmem [shape: f32[1,128], index: 10, kind: input, shape index: {}]   ;;  %s2619_s11 = inlined_call_operand.vmem [shape: f32[64,128], index: 11, kind: output, shape index: {}]  }
   0x1   :  { %v1899_v0 = vld [vmem:[%s2608_s1] sm:$0xff]   ;;  %v40_v2 = vld [vmem:[%s2609_s0 + $0x8] sm:$0xff]  ;;  %v41_v3 = vld [vmem:[%s2609_s0 + $0x10] sm:$0xff]  ;;  %vm2080_vm2 = vmmov 0   ;;  %vm295_vm3 = vcmask 523264  }
   0x2   :  { %v39_v1 = vld [vmem:[%s2609_s0] sm:$0xff]  ;;  %1795 = vmatprep.subr.bf16.mxu0 %v1899_v0  ;;  %v42_v5 = vld [vmem:[%s2609_s0 + $0x18] sm:$0xff]  ;;  %v44_v9 = vld [vmem:[%s2609_s0 + $0x28] sm:$0xff] }
   0x3   :  { %v47_v4 = vpack.c.bf16 %v40_v2, %v39_v1  ;;  %1796 = vmatpush3.bf16.msra.mxu0 %v1899_v0  ;;  %v48_v6 = vpack.c.bf16 %v42_v5, %v41_v3  ;;  %v2159_v7 = vld [vmem:[%s2610_s6] sm:$0xff]   ;;  %v45_v12 = vld [vmem:[%s2609_s0 + $0x30] sm:$0xff]  ;;  %v46_v13 = vld [vmem:[%s2609_s0 + $0x38] sm:$0xff] }
   0x4   :  { %v43_v8 = vld [vmem:[%s2609_s0 + $0x20] sm:$0xff]  ;;  %299 = vmatprep.subr.bf16.mxu0 %v2075_v10  ;;  %v50_v14 = vpack.c.bf16 %v46_v13, %v45_v12  ;;  %v2184_v15 = vld [vmem:[%s2610_s6 + $0x8] sm:$0xff]  }
   0x5   :  { %1797 = vmatprep.mubr.msk.bf16.mxu0 %vm66_vm0, %v47_v4  ;;  %v49_v11 = vpack.c.bf16 %v44_v9, %v43_v8  ;;  %v1902_v16 = vld [vmem:[%s2611_s3] sm:$0xff]   ;;  %v1904_v18 = vld [vmem:[%s2611_s3 + $0x8] sm:$0xff]  }
   0x6   :  { %1798 = vmatmul.mubr.msk.bf16.vlgmr.msra.gmra.mrb[0].mxu0 %vm66_vm0, %v48_v6  ;;  %v2193_v17 = vld [vmem:[%s2612_s7] sm:$0xff]   ;;  %1805 = vmatprep.subr.bf16.mxu1 %v1902_v16  ;;  %v2203_v19 = vld [vmem:[%s2612_s7 + $0x8] sm:$0xff]  }
   0x7   :  { %300 = vmatpush1.bf16.msra.mxu0 %v2159_v7  ;;  %1801 = vmatprep.mubr.msk.bf16.mxu0 %vm66_vm0, %v49_v11  ;;  %v1688_v21 = vld [vmem:[%s2613_s2] ss:$0 sm:$0xff] }
   0x8   :  { %301 = vmatprep.subr.bf16.mxu0 %v2075_v10  ;;  %1806 = vmatpush3.bf16.msra.mxu1 %v1902_v16  ;;  %v1694_v54 = vld [vmem:[%s2614_s4] ss:$0 sm:$0xff]  ;;  %s2077_s4 = smov 64  }
   0x9   :  { %1807 = vmatprep.subr.bf16.mxu1 %v1904_v18 }
   0xb   :  { %302 = vmatpush1.bf16.msra.mxu0 %v2184_v15 }
   0xc   :  { %303 = vmatprep.subr.bf16.mxu0 %v2193_v17  ;;  %1808 = vmatpush3.bf16.msra.mxu1 %v1904_v18 }
   0xe   :  { %1802 = vmatmul.mubr.msk.bf16.gmra.mrb[4].mxu0 %vm66_vm0, %v50_v14 }
   0xf   :  { %331 = vmatprep.mubr.bf16.mxu0 %v2075_v10  ;;  %304 = vmatpush1.bf16.msra.mxu0 %v2075_v10 }
  0x10   :  { %305 = vmatprep.subr.bf16.mxu0 %v2203_v19 }
  0x13   :  { %306 = vmatpush1.bf16.msra.mxu0 %v2075_v10 }
  0x16   :  { %332 = vmatmul.mubr.bf16.vlgmr.msra.gmra.mrb[8].mxu0 %v2076_v20 }
  0xd9   :  { %v1799_v22 = vpop.f32.mrb[0].mxu0 }
  0xda   :  { %v122_v23 = vadd.f32 %v1799_v22, %v1688_v21  ;;  %v113_v24 = vpop.f32.mrb[1].mxu0 }
  0xdb   :  { %v114_v25 = vadd.f32 %v1688_v21, %v113_v24  ;;  %v1800_v26 = vpop.f32.mrb[2].mxu0  ;;  %v2242_v24 = vld [vmem:[%s2615_s5] sm:$0xff]  }
  0xdc   :  { %v125_v27 = vadd.f32 %v1800_v26, %v1688_v21  ;;  %v116_v28 = vpop.f32.mrb[3].mxu0  ;;  %v146_v30 = vmax.f32 %v122_v23, 0.0  ;;  %v2079_v23 = vmov 0.0  }
  0xdd   :  { %v117_v29 = vadd.f32 %v1688_v21, %v116_v28  ;;  %v144_v32 = vmax.f32 %v114_v25, 0.0  ;;  %1817 = vmatprep.subr.bf16.mxu0 %v2079_v23  ;;  %1821 = vmatprep.mubr.msk.bf16.mxu0 %vm2080_vm2, %v2079_v23  ;;  %v2253_v25 = vld [vmem:[%s2615_s5 + $0x8] sm:$0xff]  }
  0xde   :  { %v147_v31 = vmax.f32 %v125_v27, 0.0  ;;  %1825 = vmatprep.subr.bf16.mxu1 %v2079_v23  ;;  %1818 = vmatpush3.bf16.msra.mxu0 %v2242_v24 }
  0xdf   :  { %v145_v33 = vmax.f32 %v117_v29, 0.0  ;;  %1819 = vmatprep.subr.bf16.mxu0 %v2079_v23 }
  0xe0   :  { %v153_v34 = vpack.c.bf16 %v147_v31, %v146_v30  ;;  %v2277_v31 = vld [vmem:[%s2616_s8] ss:$0 sm:$0xff] }
  0xe1   :  { %v152_v35 = vpack.c.bf16 %v145_v33, %v144_v32  ;;  %v1803_v36 = vpop.f32.mrb[4].mxu0 }
  0xe2   :  { %v138_v37 = vadd.f32 %v1803_v36, %v1688_v21  ;;  %v129_v38 = vpop.f32.mrb[5].mxu0  ;;  %1820 = vmatpush3.bf16.msra.mxu0 %v2253_v25 }
  0xe3   :  { %1809 = vmatprep.mubr.msk.bf16.mxu1 %vm179_vm1, %v152_v35  ;;  %v130_v39 = vadd.f32 %v1688_v21, %v129_v38  ;;  %v1804_v40 = vpop.f32.mrb[6].mxu0  ;;  %468 = vmatprep.subr.bf16.mxu0 %v2075_v10 }
  0xe4   :  { %1810 = vmatmul.mubr.msk.bf16.vlgmr.msra.gmra.mrb[0].mxu1 %vm179_vm1, %v153_v34  ;;  %v150_v41 = vmax.f32 %v138_v37, 0.0  ;;  %v141_v42 = vadd.f32 %v1804_v40, %v1688_v21  ;;  %v132_v43 = vpop.f32.mrb[7].mxu0 }
  0xe5   :  { %v148_v44 = vmax.f32 %v130_v39, 0.0  ;;  %v133_v45 = vadd.f32 %v1688_v21, %v132_v43  ;;  %1826 = vmatpush3.bf16.msra.mxu1 %v2242_v24 }
  0xe6   :  { %v151_v46 = vmax.f32 %v141_v42, 0.0  ;;  %1827 = vmatprep.subr.bf16.mxu1 %v2079_v23 }
  0xe7   :  { %v149_v47 = vmax.f32 %v133_v45, 0.0 }
  0xe8   :  { %v155_v48 = vpack.c.bf16 %v151_v46, %v150_v41 }
  0xe9   :  { %v154_v49 = vpack.c.bf16 %v149_v47, %v148_v44  ;;  %v333_v50 = vpop.f32.mrb[8].mxu0  ;;  %1828 = vmatpush3.bf16.msra.mxu1 %v2253_v25 }
  0xea   :  { %v2214_v51 = vpop.f32.mrb[9].mxu0  ;;  %619 = vmatprep.subr.bf16.mxu1 %v2075_v10 }
  0xeb   :  { %1813 = vmatprep.mubr.msk.bf16.mxu1 %vm179_vm1, %v154_v49  ;;  %v337_v52 = vpop.f32.mrb[10].mxu0 }
  0xec   :  { %1814 = vmatmul.mubr.msk.bf16.gmra.mrb[4].mxu1 %vm179_vm1, %v155_v48  ;;  %v338_v53 = vpop.f32.mrb[11].mxu0 }
  0xed   :  { %1829 = vmatprep.mubr.msk.bf16.mxu1 %vm2080_vm2, %v2079_v23 }
 0x1b7   :  { %v1811_v55 = vpop.f32.mrb[0].mxu1 }
 0x1b8   :  { %v2219_v56 = vadd.f32 %v1811_v55, %v1694_v54  ;;  %v226_v57 = vpop.f32.mrb[1].mxu1 }
 0x1b9   :  { %v227_v58 = vadd.f32 %v1694_v54, %v226_v57  ;;  %v1812_v59 = vpop.f32.mrb[2].mxu1 }
 0x1ba   :  { %v2221_v60 = vadd.f32 %v1812_v59, %v1694_v54  ;;  %v229_v61 = vpop.f32.mrb[3].mxu1 }
 0x1bb   :  { %v340_v62 = vadd.f32 %v333_v50, %v227_v58  ;;  %v2223_v63 = vadd.f32 %v1694_v54, %v229_v61 }
 0x1bd   :  { %1910 = vtanh.f32 %v340_v62  ;;  %v1705_v11 = vmul.f32 -1.442695, %v340_v62 }
 0x1bf   :  { %v1815_v0 = vpop.f32.mrb[4].mxu1  ;;  %1912 = vpow2.f32 %v1705_v11 }
 0x1c0   :  { %v2225_v1 = vadd.f32 %v1815_v0, %v1694_v54  ;;  %v242_v2 = vpop.f32.mrb[5].mxu1 }
 0x1c1   :  { %v2227_v3 = vadd.f32 %v1694_v54, %v242_v2  ;;  %v1816_v4 = vpop.f32.mrb[6].mxu1 }
 0x1c2   :  { %v2229_v5 = vadd.f32 %v1816_v4, %v1694_v54  ;;  %v245_v6 = vpop.f32.mrb[7].mxu1 }
 0x1c3   :  { %v2231_v8 = vadd.f32 %v1694_v54, %v245_v6 }
 0x1c7   :  { %v1911_v9 = vpop.eup %1910 }
 0x1c8   :  { %350 = vrot.lane.b32.xlu0 %v1911_v9, %s2077_s4 }
 0x1c9   :  { %v1913_v12 = vpop.eup %1912 }
 0x1ca   :  { %v344_v13 = vadd.f32 1.0, %v1913_v12 }
 0x1cc   :  { %1914 = vrcp.f32 %v344_v13 }
 0x1d6   :  { %v1915_v14 = vpop.eup %1914 }
 0x1d7   :  { %v348_v20 = vmul.f32 0.0, %v1915_v14 }
 0x23a   :  { %v351_v16 = vpop.permute.xlu0 %350 }
 0x23b   :  { %v353_v18 = vmul.f32 %v1915_v14, %v351_v16 }
 0x23d   :  { %355 = vrot.lane.b32.xlu0 %v353_v18, %s2078_s27 }
 0x2af   :  { %v356_v21 = vpop.permute.xlu0 %355 }
 0x2b0   :  { %v2235_v22 = vadd.f32 %v356_v21, %v348_v20 }
 0x2b2   :  { %1916 = vtanh.f32 %v2235_v22 }
 0x2bc   :  { %v1917_v26 = vpop.eup %1916 }
 0x2bd   :  { %361 = vrot.lane.b32.xlu1 %v1917_v26, %s2077_s4 }
 0x32f   :  { %v362_v27 = vpop.permute.xlu1 %361 }
 0x330   :  { %v364_v28 = vmul.f32 %v1915_v14, %v362_v27 }
 0x332   :  { %v365_v29 = vpack.c.bf16 %v364_v28, %v364_v28 }
 0x334   :  { %367 = vrot.lane.b32.xlu1 %v365_v29, %s2078_s27 }
 0x3a6   :  { %v368_v30 = vpop.permute.xlu1 %367 }
 0x3a7   :  { %1822 = vmatmul.mubr.msk.bf16.vlgmr.msra.gmra.mrb[12].mxu0 %vm179_vm1, %v368_v30 }
 0x3a8   :  { %469 = vmatpush1.bf16.msra.mxu0 %v2159_v7  ;;  %500 = vmatprep.mubr.bf16.mxu0 %v2075_v10 }
 0x3a9   :  { %470 = vmatprep.subr.bf16.mxu0 %v2075_v10 }
 0x3ac   :  { %471 = vmatpush1.bf16.msra.mxu0 %v2184_v15 }
 0x3ad   :  { %472 = vmatprep.subr.bf16.mxu0 %v2193_v17 }
 0x3b0   :  { %473 = vmatpush1.bf16.msra.mxu0 %v2075_v10 }
 0x3b1   :  { %474 = vmatprep.subr.bf16.mxu0 %v2203_v19 }
 0x3b4   :  { %475 = vmatpush1.bf16.msra.mxu0 %v2075_v10 }
 0x3b5   :  { %1833 = vmatprep.subr.bf16.mxu0 %v2079_v23 }
 0x47a   :  { %v418_v32 = vpop.f32.mrb[12].mxu0 }
 0x47b   :  { %v419_v33 = vadd.f32 %v418_v32, %v2214_v51  ;;  %v1823_v34 = vpop.f32.mrb[13].mxu0 }
 0x47c   :  { %v421_v35 = vpop.f32.mrb[14].mxu0 }
 0x47d   :  { %v430_v36 = vadd.f32 %v2277_v31, %v419_v33  ;;  %v1824_v37 = vpop.f32.mrb[15].mxu0 }
 0x47f   :  { %1918 = vtanh.f32 %v430_v36  ;;  %v1710_v39 = vmul.f32 -1.442695, %v430_v36 }
 0x481   :  { %1920 = vpow2.f32 %v1710_v39 }
 0x489   :  { %v1919_v38 = vpop.eup %1918 }
 0x48a   :  { %440 = vrot.lane.b32.xlu0 %v1919_v38, %s2077_s4 }
 0x48b   :  { %v1921_v40 = vpop.eup %1920 }
 0x48c   :  { %v434_v41 = vadd.f32 1.0, %v1921_v40 }
 0x48e   :  { %1922 = vrcp.f32 %v434_v41 }
 0x498   :  { %v1923_v42 = vpop.eup %1922 }
 0x499   :  { %v438_v45 = vmul.f32 0.0, %v1923_v42 }
 0x4fc   :  { %v441_v43 = vpop.permute.xlu0 %440 }
 0x4fd   :  { %v443_v44 = vmul.f32 %v1923_v42, %v441_v43 }
 0x4ff   :  { %445 = vrot.lane.b32.xlu1 %v443_v44, %s2078_s27 }
 0x503   :  { %456 = vrot.lane.b32.xlu1 %v364_v28, %s2078_s27 }
 0x571   :  { %v446_v46 = vpop.permute.xlu1 %445 }
 0x572   :  { %v2284_v47 = vadd.f32 %v446_v46, %v438_v45 }
 0x574   :  { %1924 = vtanh.f32 %v2284_v47 }
 0x575   :  { %v457_v51 = vpop.permute.xlu1 %456 }
 0x57e   :  { %v1925_v48 = vpop.eup %1924 }
 0x57f   :  { %451 = vrot.lane.b32.xlu0 %v1925_v48, %s2077_s4 }
 0x5f1   :  { %v452_v49 = vpop.permute.xlu0 %451 }
 0x5f2   :  { %v2288_v50 = vmul.f32 %v1923_v42, %v452_v49 }
 0x5f4   :  { %460 = vrot.lane.b32.xlu0 %v2288_v50, %s2077_s4 }
 0x666   :  { %v461_v52 = vpop.permute.xlu0 %460 }
 0x667   :  { %v463_v53 = vsel %vm179_vm1, %v457_v51, %v461_v52 }
 0x668   :  { %v464_v54 = vpack.c.bf16 %v463_v53, %v463_v53 }
 0x66a   :  { %1711 = vmatmul.mubr.msk.bf16.vlgmr.msra.gmra.mrb[16].mxu0 %vm295_vm3, %v464_v54 }
 0x66b   :  { %1834 = vmatpush3.bf16.msra.mxu0 %v2242_v24  ;;  %1837 = vmatprep.mubr.msk.bf16.mxu0 %vm2080_vm2, %v2079_v23 }
 0x66c   :  { %1835 = vmatprep.subr.bf16.mxu0 %v2079_v23 }
 0x66f   :  { %1836 = vmatpush3.bf16.msra.mxu0 %v2253_v25 }
 0x670   :  { %770 = vmatprep.subr.bf16.mxu0 %v2075_v10 }
 0x73d   :  { %v502_v55 = vpop.f32.mrb[16].mxu0 }
 0x73e   :  { %v509_v57 = vadd.f32 %v502_v55, %v2223_v63  ;;  %v504_v58 = vpop.f32.mrb[17].mxu0 }
 0x73f   :  { %v506_v59 = vpop.f32.mrb[18].mxu0 }
 0x740   :  { %1926 = vtanh.f32 %v509_v57  ;;  %v507_v61 = vpop.f32.mrb[19].mxu0  ;;  %v1712_v0 = vmul.f32 -1.442695, %v509_v57 }
 0x742   :  { %1928 = vpow2.f32 %v1712_v0 }
 0x74a   :  { %v1927_v62 = vpop.eup %1926 }
 0x74b   :  { %519 = vrot.lane.b32.xlu1 %v1927_v62, %s2077_s4 }
 0x74c   :  { %v1929_v2 = vpop.eup %1928 }
 0x74d   :  { %v513_v4 = vadd.f32 1.0, %v1929_v2 }
 0x74f   :  { %1930 = vrcp.f32 %v513_v4 }
 0x759   :  { %v1931_v6 = vpop.eup %1930 }
 0x75a   :  { %v517_v12 = vmul.f32 %v1931_v6, %v2235_v22 }
 0x7bd   :  { %v520_v9 = vpop.permute.xlu1 %519 }
 0x7be   :  { %v522_v11 = vmul.f32 %v1931_v6, %v520_v9 }
 0x7c0   :  { %524 = vrot.lane.b32.xlu0 %v522_v11, %s2078_s27 }
 0x832   :  { %v525_v63 = vpop.permute.xlu0 %524 }
 0x833   :  { %v2304_v13 = vadd.f32 %v525_v63, %v517_v12 }
 0x835   :  { %1932 = vtanh.f32 %v2304_v13 }
 0x83f   :  { %v1933_v14 = vpop.eup %1932 }
 0x840   :  { %530 = vrot.lane.b32.xlu1 %v1933_v14, %s2077_s4 }
 0x8b2   :  { %v531_v16 = vpop.permute.xlu1 %530 }
 0x8b3   :  { %v533_v18 = vmul.f32 %v1931_v6, %v531_v16 }
 0x8b5   :  { %v534_v20 = vpack.c.bf16 %v533_v18, %v533_v18 }
 0x8b7   :  { %536 = vrot.lane.b32.xlu0 %v534_v20, %s2078_s27 }
 0x929   :  { %v537_v21 = vpop.permute.xlu0 %536 }
 0x92a   :  { %1830 = vmatmul.mubr.msk.bf16.vlgmr.msra.gmra.mrb[8].mxu1 %vm179_vm1, %v537_v21 }
 0x92b   :  { %620 = vmatpush1.bf16.msra.mxu1 %v2159_v7  ;;  %651 = vmatprep.mubr.bf16.mxu1 %v2075_v10 }
 0x92c   :  { %621 = vmatprep.subr.bf16.mxu1 %v2075_v10 }
 0x92f   :  { %622 = vmatpush1.bf16.msra.mxu1 %v2184_v15 }
 0x930   :  { %623 = vmatprep.subr.bf16.mxu1 %v2193_v17 }
 0x933   :  { %624 = vmatpush1.bf16.msra.mxu1 %v2075_v10 }
 0x934   :  { %625 = vmatprep.subr.bf16.mxu1 %v2203_v19 }
 0x937   :  { %626 = vmatpush1.bf16.msra.mxu1 %v2075_v10 }
 0x938   :  { %1841 = vmatprep.subr.bf16.mxu1 %v2079_v23 }
 0x9fd   :  { %v575_v22 = vpop.f32.mrb[8].mxu1 }
 0x9fe   :  { %v576_v26 = vadd.f32 %v575_v22, %v504_v58  ;;  %v1831_v27 = vpop.f32.mrb[9].mxu1 }
 0x9ff   :  { %v578_v28 = vpop.f32.mrb[10].mxu1 }
 0xa00   :  { %v581_v29 = vadd.f32 %v2277_v31, %v576_v26  ;;  %v1832_v30 = vpop.f32.mrb[11].mxu1 }
 0xa02   :  { %1934 = vtanh.f32 %v581_v29  ;;  %v1714_v33 = vmul.f32 -1.442695, %v581_v29 }
 0xa04   :  { %1936 = vpow2.f32 %v1714_v33 }
 0xa0c   :  { %v1935_v32 = vpop.eup %1934 }
 0xa0d   :  { %591 = vrot.lane.b32.xlu1 %v1935_v32, %s2077_s4 }
 0xa0e   :  { %v1937_v34 = vpop.eup %1936 }
 0xa0f   :  { %v585_v35 = vadd.f32 1.0, %v1937_v34 }
 0xa11   :  { %1938 = vrcp.f32 %v585_v35 }
 0xa1b   :  { %v1939_v36 = vpop.eup %1938 }
 0xa1c   :  { %v589_v39 = vmul.f32 %v1939_v36, %v2284_v47 }
 0xa7f   :  { %v592_v37 = vpop.permute.xlu1 %591 }
 0xa80   :  { %v594_v38 = vmul.f32 %v1939_v36, %v592_v37 }
 0xa82   :  { %596 = vrot.lane.b32.xlu0 %v594_v38, %s2078_s27 }
 0xa86   :  { %607 = vrot.lane.b32.xlu0 %v533_v18, %s2078_s27 }
 0xaf4   :  { %v597_v40 = vpop.permute.xlu0 %596 }
 0xaf5   :  { %v2324_v41 = vadd.f32 %v597_v40, %v589_v39 }
 0xaf7   :  { %1940 = vtanh.f32 %v2324_v41 }
 0xaf8   :  { %v608_v45 = vpop.permute.xlu0 %607 }
 0xb01   :  { %v1941_v42 = vpop.eup %1940 }
 0xb02   :  { %602 = vrot.lane.b32.xlu1 %v1941_v42, %s2077_s4 }
 0xb74   :  { %v603_v43 = vpop.permute.xlu1 %602 }
 0xb75   :  { %v2328_v44 = vmul.f32 %v1939_v36, %v603_v43 }
 0xb77   :  { %611 = vrot.lane.b32.xlu1 %v2328_v44, %s2077_s4 }
 0xbe9   :  { %v612_v46 = vpop.permute.xlu1 %611 }
 0xbea   :  { %v614_v48 = vsel %vm179_vm1, %v608_v45, %v612_v46 }
 0xbeb   :  { %v615_v49 = vpack.c.bf16 %v614_v48, %v614_v48 }
 0xbed   :  { %1715 = vmatmul.mubr.msk.bf16.vlgmr.msra.gmra.mrb[12].mxu1 %vm295_vm3, %v615_v49 }
 0xbee   :  { %1842 = vmatpush3.bf16.msra.mxu1 %v2242_v24  ;;  %1845 = vmatprep.mubr.msk.bf16.mxu1 %vm2080_vm2, %v2079_v23 }
 0xbef   :  { %1843 = vmatprep.subr.bf16.mxu1 %v2079_v23 }
 0xbf2   :  { %1844 = vmatpush3.bf16.msra.mxu1 %v2253_v25 }
 0xbf3   :  { %921 = vmatprep.subr.bf16.mxu1 %v2075_v10 }
 0xcc0   :  { %v653_v47 = vpop.f32.mrb[12].mxu1 }
 0xcc1   :  { %v660_v51 = vadd.f32 %v653_v47, %v2219_v56  ;;  %v655_v52 = vpop.f32.mrb[13].mxu1 }
 0xcc2   :  { %v657_v53 = vpop.f32.mrb[14].mxu1 }
 0xcc3   :  { %1942 = vtanh.f32 %v660_v51  ;;  %v658_v54 = vpop.f32.mrb[15].mxu1  ;;  %v1716_v57 = vmul.f32 -1.442695, %v660_v51 }
 0xcc5   :  { %1944 = vpow2.f32 %v1716_v57 }
 0xccd   :  { %v1943_v55 = vpop.eup %1942 }
 0xcce   :  { %670 = vrot.lane.b32.xlu0 %v1943_v55, %s2077_s4 }
 0xccf   :  { %v1945_v58 = vpop.eup %1944 }
 0xcd0   :  { %v664_v59 = vadd.f32 1.0, %v1945_v58 }
 0xcd2   :  { %1946 = vrcp.f32 %v664_v59 }
 0xcdc   :  { %v1947_v61 = vpop.eup %1946 }
 0xcdd   :  { %v668_v2 = vmul.f32 %v1947_v61, %v2304_v13 }
 0xd40   :  { %v671_v62 = vpop.permute.xlu0 %670 }
 0xd41   :  { %v673_v0 = vmul.f32 %v1947_v61, %v671_v62 }
 0xd43   :  { %675 = vrot.lane.b32.xlu1 %v673_v0, %s2078_s27 }
 0xdb5   :  { %v676_v56 = vpop.permute.xlu1 %675 }
 0xdb6   :  { %v2344_v4 = vadd.f32 %v676_v56, %v668_v2 }
 0xdb8   :  { %1948 = vtanh.f32 %v2344_v4 }
 0xdc2   :  { %v1949_v6 = vpop.eup %1948 }
 0xdc3   :  { %681 = vrot.lane.b32.xlu0 %v1949_v6, %s2077_s4 }
 0xe35   :  { %v682_v9 = vpop.permute.xlu0 %681 }
 0xe36   :  { %v684_v11 = vmul.f32 %v1947_v61, %v682_v9 }
 0xe38   :  { %v685_v12 = vpack.c.bf16 %v684_v11, %v684_v11 }
 0xe3a   :  { %687 = vrot.lane.b32.xlu1 %v685_v12, %s2078_s27 }
 0xeac   :  { %v688_v63 = vpop.permute.xlu1 %687 }
 0xead   :  { %1838 = vmatmul.mubr.msk.bf16.vlgmr.msra.gmra.mrb[20].mxu0 %vm179_vm1, %v688_v63 }
 0xeae   :  { %771 = vmatpush1.bf16.msra.mxu0 %v2159_v7  ;;  %802 = vmatprep.mubr.bf16.mxu0 %v2075_v10 }
 0xeaf   :  { %772 = vmatprep.subr.bf16.mxu0 %v2075_v10 }
 0xeb2   :  { %773 = vmatpush1.bf16.msra.mxu0 %v2184_v15 }
 0xeb3   :  { %774 = vmatprep.subr.bf16.mxu0 %v2193_v17 }
 0xeb6   :  { %775 = vmatpush1.bf16.msra.mxu0 %v2075_v10 }
 0xeb7   :  { %776 = vmatprep.subr.bf16.mxu0 %v2203_v19 }
 0xeba   :  { %777 = vmatpush1.bf16.msra.mxu0 %v2075_v10 }
 0xebb   :  { %1849 = vmatprep.subr.bf16.mxu0 %v2079_v23 }
 0xf80   :  { %v726_v13 = vpop.f32.mrb[20].mxu0 }
 0xf81   :  { %v727_v14 = vadd.f32 %v726_v13, %v655_v52  ;;  %v1839_v16 = vpop.f32.mrb[21].mxu0 }
 0xf82   :  { %v729_v18 = vpop.f32.mrb[22].mxu0 }
 0xf83   :  { %v732_v20 = vadd.f32 %v2277_v31, %v727_v14  ;;  %v1840_v21 = vpop.f32.mrb[23].mxu0 }
 0xf85   :  { %1950 = vtanh.f32 %v732_v20  ;;  %v1718_v26 = vmul.f32 -1.442695, %v732_v20 }
 0xf87   :  { %1952 = vpow2.f32 %v1718_v26 }
 0xf8f   :  { %v1951_v22 = vpop.eup %1950 }
 0xf90   :  { %742 = vrot.lane.b32.xlu0 %v1951_v22, %s2077_s4 }
 0xf91   :  { %v1953_v27 = vpop.eup %1952 }
 0xf92   :  { %v736_v28 = vadd.f32 1.0, %v1953_v27 }
 0xf94   :  { %1954 = vrcp.f32 %v736_v28 }
 0xf9e   :  { %v1955_v29 = vpop.eup %1954 }
 0xf9f   :  { %v740_v33 = vmul.f32 %v1955_v29, %v2324_v41 }
0x1002   :  { %v743_v30 = vpop.permute.xlu0 %742 }
0x1003   :  { %v745_v32 = vmul.f32 %v1955_v29, %v743_v30 }
0x1005   :  { %747 = vrot.lane.b32.xlu1 %v745_v32, %s2078_s27 }
0x1009   :  { %758 = vrot.lane.b32.xlu1 %v684_v11, %s2078_s27 }
0x1077   :  { %v748_v34 = vpop.permute.xlu1 %747 }
0x1078   :  { %v2364_v35 = vadd.f32 %v748_v34, %v740_v33 }
0x107a   :  { %1956 = vtanh.f32 %v2364_v35 }
0x107b   :  { %v759_v39 = vpop.permute.xlu1 %758 }
0x1084   :  { %v1957_v36 = vpop.eup %1956 }
0x1085   :  { %753 = vrot.lane.b32.xlu0 %v1957_v36, %s2077_s4 }
0x10f7   :  { %v754_v37 = vpop.permute.xlu0 %753 }
0x10f8   :  { %v2368_v38 = vmul.f32 %v1955_v29, %v754_v37 }
0x10fa   :  { %762 = vrot.lane.b32.xlu0 %v2368_v38, %s2077_s4 }
0x116c   :  { %v763_v40 = vpop.permute.xlu0 %762 }
0x116d   :  { %v765_v42 = vsel %vm179_vm1, %v759_v39, %v763_v40 }
0x116e   :  { %v766_v43 = vpack.c.bf16 %v765_v42, %v765_v42 }
0x1170   :  { %1719 = vmatmul.mubr.msk.bf16.vlgmr.msra.gmra.mrb[24].mxu0 %vm295_vm3, %v766_v43 }
0x1171   :  { %1850 = vmatpush3.bf16.msra.mxu0 %v2242_v24  ;;  %1853 = vmatprep.mubr.msk.bf16.mxu0 %vm2080_vm2, %v2079_v23 }
0x1172   :  { %1851 = vmatprep.subr.bf16.mxu0 %v2079_v23 }
0x1175   :  { %1852 = vmatpush3.bf16.msra.mxu0 %v2253_v25 }
0x1176   :  { %1072 = vmatprep.subr.bf16.mxu0 %v2075_v10 }
0x1243   :  { %v804_v41 = vpop.f32.mrb[24].mxu0 }
0x1244   :  { %v811_v45 = vadd.f32 %v804_v41, %v2221_v60  ;;  %v806_v46 = vpop.f32.mrb[25].mxu0 }
0x1245   :  { %v808_v48 = vpop.f32.mrb[26].mxu0 }
0x1246   :  { %1958 = vtanh.f32 %v811_v45  ;;  %v809_v49 = vpop.f32.mrb[27].mxu0  ;;  %v1720_v51 = vmul.f32 -1.442695, %v811_v45 }
0x1248   :  { %1960 = vpow2.f32 %v1720_v51 }
0x1250   :  { %v1959_v47 = vpop.eup %1958 }
0x1251   :  { %821 = vrot.lane.b32.xlu1 %v1959_v47, %s2077_s4 }
0x1252   :  { %v1961_v52 = vpop.eup %1960 }
0x1253   :  { %v815_v53 = vadd.f32 1.0, %v1961_v52 }
0x1255   :  { %1962 = vrcp.f32 %v815_v53 }
0x125f   :  { %v1963_v54 = vpop.eup %1962 }
0x1260   :  { %v819_v58 = vmul.f32 %v1963_v54, %v2344_v4 }
0x12c3   :  { %v822_v55 = vpop.permute.xlu1 %821 }
0x12c4   :  { %v824_v57 = vmul.f32 %v1963_v54, %v822_v55 }
0x12c6   :  { %826 = vrot.lane.b32.xlu0 %v824_v57, %s2078_s27 }
0x1338   :  { %v827_v60 = vpop.permute.xlu0 %826 }
0x1339   :  { %v2384_v59 = vadd.f32 %v827_v60, %v819_v58 }
0x133b   :  { %1964 = vtanh.f32 %v2384_v59 }
0x1345   :  { %v1965_v61 = vpop.eup %1964 }
0x1346   :  { %832 = vrot.lane.b32.xlu1 %v1965_v61, %s2077_s4 }
0x13b8   :  { %v833_v62 = vpop.permute.xlu1 %832 }
0x13b9   :  { %v835_v0 = vmul.f32 %v1963_v54, %v833_v62 }
0x13bb   :  { %v836_v2 = vpack.c.bf16 %v835_v0, %v835_v0 }
0x13bd   :  { %838 = vrot.lane.b32.xlu0 %v836_v2, %s2078_s27 }
0x142f   :  { %v839_v56 = vpop.permute.xlu0 %838 }
0x1430   :  { %1846 = vmatmul.mubr.msk.bf16.vlgmr.msra.gmra.mrb[16].mxu1 %vm179_vm1, %v839_v56 }
0x1431   :  { %922 = vmatpush1.bf16.msra.mxu1 %v2159_v7  ;;  %953 = vmatprep.mubr.bf16.mxu1 %v2075_v10 }
0x1432   :  { %923 = vmatprep.subr.bf16.mxu1 %v2075_v10 }
0x1435   :  { %924 = vmatpush1.bf16.msra.mxu1 %v2184_v15 }
0x1436   :  { %925 = vmatprep.subr.bf16.mxu1 %v2193_v17 }
0x1439   :  { %926 = vmatpush1.bf16.msra.mxu1 %v2075_v10 }
0x143a   :  { %927 = vmatprep.subr.bf16.mxu1 %v2203_v19 }
0x143d   :  { %928 = vmatpush1.bf16.msra.mxu1 %v2075_v10 }
0x143e   :  { %1857 = vmatprep.subr.bf16.mxu1 %v2079_v23 }
0x1503   :  { %v877_v4 = vpop.f32.mrb[16].mxu1 }
0x1504   :  { %v878_v6 = vadd.f32 %v877_v4, %v806_v46  ;;  %v1847_v9 = vpop.f32.mrb[17].mxu1 }
0x1505   :  { %v880_v11 = vpop.f32.mrb[18].mxu1 }
0x1506   :  { %v883_v12 = vadd.f32 %v2277_v31, %v878_v6  ;;  %v1848_v63 = vpop.f32.mrb[19].mxu1 }
0x1508   :  { %1966 = vtanh.f32 %v883_v12  ;;  %v1722_v14 = vmul.f32 -1.442695, %v883_v12 }
0x150a   :  { %1968 = vpow2.f32 %v1722_v14 }
0x1512   :  { %v1967_v13 = vpop.eup %1966 }
0x1513   :  { %893 = vrot.lane.b32.xlu1 %v1967_v13, %s2077_s4 }
0x1514   :  { %v1969_v16 = vpop.eup %1968 }
0x1515   :  { %v887_v18 = vadd.f32 1.0, %v1969_v16 }
0x1517   :  { %1970 = vrcp.f32 %v887_v18 }
0x1521   :  { %v1971_v20 = vpop.eup %1970 }
0x1522   :  { %v891_v26 = vmul.f32 %v1971_v20, %v2364_v35 }
0x1585   :  { %v894_v21 = vpop.permute.xlu1 %893 }
0x1586   :  { %v896_v22 = vmul.f32 %v1971_v20, %v894_v21 }
0x1588   :  { %898 = vrot.lane.b32.xlu0 %v896_v22, %s2078_s27 }
0x158c   :  { %909 = vrot.lane.b32.xlu0 %v835_v0, %s2078_s27 }
0x15fa   :  { %v899_v27 = vpop.permute.xlu0 %898 }
0x15fb   :  { %v2404_v28 = vadd.f32 %v899_v27, %v891_v26 }
0x15fd   :  { %1972 = vtanh.f32 %v2404_v28 }
0x15fe   :  { %v910_v33 = vpop.permute.xlu0 %909 }
0x1607   :  { %v1973_v29 = vpop.eup %1972 }
0x1608   :  { %904 = vrot.lane.b32.xlu1 %v1973_v29, %s2077_s4 }
0x167a   :  { %v905_v30 = vpop.permute.xlu1 %904 }
0x167b   :  { %v2408_v32 = vmul.f32 %v1971_v20, %v905_v30 }
0x167d   :  { %913 = vrot.lane.b32.xlu1 %v2408_v32, %s2077_s4 }
0x16ef   :  { %v914_v34 = vpop.permute.xlu1 %913 }
0x16f0   :  { %v916_v36 = vsel %vm179_vm1, %v910_v33, %v914_v34 }
0x16f1   :  { %v917_v37 = vpack.c.bf16 %v916_v36, %v916_v36 }
0x16f3   :  { %1723 = vmatmul.mubr.msk.bf16.vlgmr.msra.gmra.mrb[20].mxu1 %vm295_vm3, %v917_v37 }
0x16f4   :  { %1858 = vmatpush3.bf16.msra.mxu1 %v2242_v24  ;;  %1861 = vmatprep.mubr.msk.bf16.mxu1 %vm2080_vm2, %v2079_v23 }
0x16f5   :  { %1859 = vmatprep.subr.bf16.mxu1 %v2079_v23 }
0x16f8   :  { %1860 = vmatpush3.bf16.msra.mxu1 %v2253_v25 }
0x16f9   :  { %1223 = vmatprep.subr.bf16.mxu1 %v2075_v10 }
0x17c6   :  { %v955_v35 = vpop.f32.mrb[20].mxu1 }
0x17c7   :  { %v962_v39 = vadd.f32 %v955_v35, %v2227_v3  ;;  %v957_v40 = vpop.f32.mrb[21].mxu1 }
0x17c8   :  { %v959_v42 = vpop.f32.mrb[22].mxu1 }
0x17c9   :  { %1974 = vtanh.f32 %v962_v39  ;;  %v960_v43 = vpop.f32.mrb[23].mxu1  ;;  %v1724_v45 = vmul.f32 -1.442695, %v962_v39 }
0x17cb   :  { %1976 = vpow2.f32 %v1724_v45 }
0x17d3   :  { %v1975_v41 = vpop.eup %1974 }
0x17d4   :  { %972 = vrot.lane.b32.xlu0 %v1975_v41, %s2077_s4 }
0x17d5   :  { %v1977_v46 = vpop.eup %1976 }
0x17d6   :  { %v966_v48 = vadd.f32 1.0, %v1977_v46 }
0x17d8   :  { %1978 = vrcp.f32 %v966_v48 }
0x17e2   :  { %v1979_v49 = vpop.eup %1978 }
0x17e3   :  { %v970_v52 = vmul.f32 %v1979_v49, %v2384_v59 }
0x1846   :  { %v973_v47 = vpop.permute.xlu0 %972 }
0x1847   :  { %v975_v51 = vmul.f32 %v1979_v49, %v973_v47 }
0x1849   :  { %977 = vrot.lane.b32.xlu1 %v975_v51, %s2078_s27 }
0x18bb   :  { %v978_v3 = vpop.permute.xlu1 %977 }
0x18bc   :  { %v2424_v53 = vadd.f32 %v978_v3, %v970_v52  ;;  %v2473_v52 = vld [vmem:[%s2610_s6] sm:$0xff]   ;;  %v2481_v3 = vld [vmem:[%s2610_s6 + $0x8] sm:$0xff]  }
0x18be   :  { %1980 = vtanh.f32 %v2424_v53 }
0x18c8   :  { %v1981_v54 = vpop.eup %1980 }
0x18c9   :  { %983 = vrot.lane.b32.xlu0 %v1981_v54, %s2077_s4 }
0x193b   :  { %v984_v55 = vpop.permute.xlu0 %983 }
0x193c   :  { %v986_v57 = vmul.f32 %v1979_v49, %v984_v55 }
0x193e   :  { %v987_v58 = vpack.c.bf16 %v986_v57, %v986_v57 }
0x1940   :  { %989 = vrot.lane.b32.xlu1 %v987_v58, %s2078_s27 }
0x19b2   :  { %v990_v60 = vpop.permute.xlu1 %989 }
0x19b3   :  { %1854 = vmatmul.mubr.msk.bf16.vlgmr.msra.gmra.mrb[28].mxu0 %vm179_vm1, %v990_v60 }
0x19b4   :  { %1073 = vmatpush1.bf16.msra.mxu0 %v2159_v7  ;;  %1104 = vmatprep.mubr.bf16.mxu0 %v2075_v10 }
0x19b5   :  { %1074 = vmatprep.subr.bf16.mxu0 %v2075_v10 }
0x19b8   :  { %1075 = vmatpush1.bf16.msra.mxu0 %v2184_v15 }
0x19b9   :  { %1076 = vmatprep.subr.bf16.mxu0 %v2193_v17 }
0x19bc   :  { %1077 = vmatpush1.bf16.msra.mxu0 %v2075_v10 }
0x19bd   :  { %1078 = vmatprep.subr.bf16.mxu0 %v2203_v19 }
0x19c0   :  { %1079 = vmatpush1.bf16.msra.mxu0 %v2075_v10 }
0x19c1   :  { %1865 = vmatprep.subr.bf16.mxu0 %v2079_v23 }
0x1a86   :  { %v1028_v59 = vpop.f32.mrb[28].mxu0 }
0x1a87   :  { %v1029_v61 = vadd.f32 %v1028_v59, %v957_v40  ;;  %v1855_v62 = vpop.f32.mrb[29].mxu0 }
0x1a88   :  { %v1031_v7 = vpop.f32.mrb[30].mxu0 }
0x1a89   :  { %v1034_v0 = vadd.f32 %v2277_v31, %v1029_v61  ;;  %v1856_v2 = vpop.f32.mrb[31].mxu0 }
0x1a8b   :  { %1982 = vtanh.f32 %v1034_v0  ;;  %v1726_v15 = vmul.f32 -1.442695, %v1034_v0 }
0x1a8d   :  { %1984 = vpow2.f32 %v1726_v15 }
0x1a95   :  { %v1983_v56 = vpop.eup %1982 }
0x1a96   :  { %1044 = vrot.lane.b32.xlu0 %v1983_v56, %s2077_s4 }
0x1a97   :  { %v1985_v4 = vpop.eup %1984 }
0x1a98   :  { %v1038_v6 = vadd.f32 1.0, %v1985_v4 }
0x1a9a   :  { %1986 = vrcp.f32 %v1038_v6 }
0x1aa4   :  { %v1987_v9 = vpop.eup %1986 }
0x1aa5   :  { %v1042_v63 = vmul.f32 %v1987_v9, %v2404_v28 }
0x1b08   :  { %v1045_v11 = vpop.permute.xlu0 %1044 }
0x1b09   :  { %v1047_v12 = vmul.f32 %v1987_v9, %v1045_v11 }
0x1b0b   :  { %1049 = vrot.lane.b32.xlu1 %v1047_v12, %s2078_s27 }
0x1b0f   :  { %1060 = vrot.lane.b32.xlu1 %v986_v57, %s2078_s27 }
0x1b7d   :  { %v1050_v13 = vpop.permute.xlu1 %1049 }
0x1b7e   :  { %v2444_v14 = vadd.f32 %v1050_v13, %v1042_v63 }
0x1b80   :  { %1988 = vtanh.f32 %v2444_v14 }
0x1b81   :  { %v1061_v21 = vpop.permute.xlu1 %1060 }
0x1b8a   :  { %v1989_v16 = vpop.eup %1988 }
0x1b8b   :  { %1055 = vrot.lane.b32.xlu0 %v1989_v16, %s2077_s4 }
0x1bfd   :  { %v1056_v18 = vpop.permute.xlu0 %1055 }
0x1bfe   :  { %v2448_v20 = vmul.f32 %v1987_v9, %v1056_v18 }
0x1c00   :  { %1064 = vrot.lane.b32.xlu0 %v2448_v20, %s2077_s4 }
0x1c72   :  { %v1065_v22 = vpop.permute.xlu0 %1064 }
0x1c73   :  { %v1067_v26 = vsel %vm179_vm1, %v1061_v21, %v1065_v22 }
0x1c74   :  { %v1068_v27 = vpack.c.bf16 %v1067_v26, %v1067_v26 }
0x1c76   :  { %1727 = vmatmul.mubr.msk.bf16.vlgmr.msra.gmra.mrb[32].mxu0 %vm295_vm3, %v1068_v27 }
0x1c77   :  { %1866 = vmatpush3.bf16.msra.mxu0 %v2242_v24  ;;  %1869 = vmatprep.mubr.msk.bf16.mxu0 %vm2080_vm2, %v2079_v23 }
0x1c78   :  { %1867 = vmatprep.subr.bf16.mxu0 %v2079_v23 }
0x1c7b   :  { %1868 = vmatpush3.bf16.msra.mxu0 %v2253_v25 }
0x1c7c   :  { %1374 = vmatprep.subr.bf16.mxu0 %v2075_v10 }
0x1d49   :  { %v1106_v28 = vpop.f32.mrb[32].mxu0 }
0x1d4a   :  { %v1113_v29 = vadd.f32 %v1106_v28, %v2231_v8  ;;  %v1108_v30 = vpop.f32.mrb[33].mxu0 }
0x1d4b   :  { %v1110_v33 = vpop.f32.mrb[34].mxu0 }
0x1d4c   :  { %1990 = vtanh.f32 %v1113_v29  ;;  %v1111_v34 = vpop.f32.mrb[35].mxu0  ;;  %v1728_v37 = vmul.f32 -1.442695, %v1113_v29 }
0x1d4e   :  { %1992 = vpow2.f32 %v1728_v37 }
0x1d56   :  { %v1991_v36 = vpop.eup %1990 }
0x1d57   :  { %1123 = vrot.lane.b32.xlu1 %v1991_v36, %s2077_s4 }
0x1d58   :  { %v1993_v35 = vpop.eup %1992 }
0x1d59   :  { %v1117_v39 = vadd.f32 1.0, %v1993_v35 }
0x1d5b   :  { %1994 = vrcp.f32 %v1117_v39 }
0x1d65   :  { %v1995_v40 = vpop.eup %1994 }
0x1d66   :  { %v1121_v41 = vmul.f32 %v1995_v40, %v2424_v53 }
0x1dc9   :  { %v1124_v42 = vpop.permute.xlu1 %1123 }
0x1dca   :  { %v1126_v43 = vmul.f32 %v1995_v40, %v1124_v42  ;;  %v2073_v42 = vld [vmem:[%s2612_s7 + $0x8] sm:$0xff]  }
0x1dcc   :  { %1128 = vrot.lane.b32.xlu0 %v1126_v43, %s2078_s27 }
0x1e3e   :  { %v1129_v8 = vpop.permute.xlu0 %1128 }
0x1e3f   :  { %v2464_v45 = vadd.f32 %v1129_v8, %v1121_v41 }
0x1e41   :  { %1996 = vtanh.f32 %v2464_v45 }
0x1e4b   :  { %v1997_v46 = vpop.eup %1996 }
0x1e4c   :  { %1134 = vrot.lane.b32.xlu1 %v1997_v46, %s2077_s4 }
0x1ebe   :  { %v1135_v48 = vpop.permute.xlu1 %1134 }
0x1ebf   :  { %v1137_v49 = vmul.f32 %v1995_v40, %v1135_v48  ;;  %v2072_v40 = vld [vmem:[%s2612_s7] sm:$0xff]  }
0x1ec1   :  { %v1138_v47 = vpack.c.bf16 %v1137_v49, %v1137_v49 }
0x1ec3   :  { %1140 = vrot.lane.b32.xlu0 %v1138_v47, %s2078_s27 }
0x1f35   :  { %v1141_v51 = vpop.permute.xlu0 %1140 }
0x1f36   :  { %1862 = vmatmul.mubr.msk.bf16.vlgmr.msra.gmra.mrb[24].mxu1 %vm179_vm1, %v1141_v51 }
0x1f37   :  { %1224 = vmatpush1.bf16.msra.mxu1 %v2473_v52  ;;  %1255 = vmatprep.mubr.bf16.mxu1 %v2075_v10 }
0x1f38   :  { %1225 = vmatprep.subr.bf16.mxu1 %v2075_v10 }
0x1f3b   :  { %1226 = vmatpush1.bf16.msra.mxu1 %v2481_v3 }
0x1f3c   :  { %1227 = vmatprep.subr.bf16.mxu1 %v2193_v17 }
0x1f3f   :  { %1228 = vmatpush1.bf16.msra.mxu1 %v2075_v10 }
0x1f40   :  { %1229 = vmatprep.subr.bf16.mxu1 %v2203_v19 }
0x1f43   :  { %1230 = vmatpush1.bf16.msra.mxu1 %v2075_v10 }
0x1f44   :  { %1873 = vmatprep.subr.bf16.mxu1 %v2079_v23 }
0x2009   :  { %v1179_v53 = vpop.f32.mrb[24].mxu1 }
0x200a   :  { %v1180_v54 = vadd.f32 %v1179_v53, %v1108_v30  ;;  %v1863_v55 = vpop.f32.mrb[25].mxu1 }
0x200b   :  { %v1182_v57 = vpop.f32.mrb[26].mxu1 }
0x200c   :  { %v1185_v58 = vadd.f32 %v2277_v31, %v1180_v54  ;;  %v1864_v60 = vpop.f32.mrb[27].mxu1 }
0x200e   :  { %1998 = vtanh.f32 %v1185_v58  ;;  %v1730_v17 = vmul.f32 -1.442695, %v1185_v58 }
0x2010   :  { %2000 = vpow2.f32 %v1730_v17 }
0x2018   :  { %v1999_v59 = vpop.eup %1998 }
0x2019   :  { %1195 = vrot.lane.b32.xlu1 %v1999_v59, %s2077_s4 }
0x201a   :  { %v2001_v61 = vpop.eup %2000 }
0x201b   :  { %v1189_v62 = vadd.f32 1.0, %v2001_v61 }
0x201d   :  { %2002 = vrcp.f32 %v1189_v62 }
0x2027   :  { %v2003_v19 = vpop.eup %2002 }
0x2028   :  { %v1193_v2 = vmul.f32 %v2003_v19, %v2444_v14 }
0x208b   :  { %v1196_v7 = vpop.permute.xlu1 %1195 }
0x208c   :  { %v1198_v0 = vmul.f32 %v2003_v19, %v1196_v7 }
0x208e   :  { %1200 = vrot.lane.b32.xlu0 %v1198_v0, %s2078_s27 }
0x2092   :  { %1211 = vrot.lane.b32.xlu0 %v1137_v49, %s2078_s27 }
0x2100   :  { %v1201_v56 = vpop.permute.xlu0 %1200 }
0x2101   :  { %v2494_v15 = vadd.f32 %v1201_v56, %v1193_v2 }
0x2103   :  { %2004 = vtanh.f32 %v2494_v15 }
0x2104   :  { %v1212_v11 = vpop.permute.xlu0 %1211 }
0x210d   :  { %v2005_v4 = vpop.eup %2004 }
0x210e   :  { %1206 = vrot.lane.b32.xlu1 %v2005_v4, %s2077_s4 }
0x2180   :  { %v1207_v6 = vpop.permute.xlu1 %1206 }
0x2181   :  { %v2498_v9 = vmul.f32 %v2003_v19, %v1207_v6 }
0x2183   :  { %1215 = vrot.lane.b32.xlu1 %v2498_v9, %s2077_s4 }
0x21f5   :  { %v1216_v12 = vpop.permute.xlu1 %1215 }
0x21f6   :  { %v1218_v63 = vsel %vm179_vm1, %v1212_v11, %v1216_v12 }
0x21f7   :  { %v1219_v13 = vpack.c.bf16 %v1218_v63, %v1218_v63 }
0x21f9   :  { %1731 = vmatmul.mubr.msk.bf16.vlgmr.msra.gmra.mrb[28].mxu1 %vm295_vm3, %v1219_v13 }
0x21fa   :  { %1874 = vmatpush3.bf16.msra.mxu1 %v2242_v24  ;;  %1877 = vmatprep.mubr.msk.bf16.mxu1 %vm2080_vm2, %v2079_v23 }
0x21fb   :  { %1875 = vmatprep.subr.bf16.mxu1 %v2079_v23 }
0x21fe   :  { %1876 = vmatpush3.bf16.msra.mxu1 %v2253_v25 }
0x22cc   :  { %v1257_v14 = vpop.f32.mrb[28].mxu1 }
0x22cd   :  { %v1264_v16 = vadd.f32 %v1257_v14, %v2225_v1  ;;  %v1259_v18 = vpop.f32.mrb[29].mxu1 }
0x22ce   :  { %v1261_v21 = vpop.f32.mrb[30].mxu1 }
0x22cf   :  { %2006 = vtanh.f32 %v1264_v16  ;;  %v1262_v22 = vpop.f32.mrb[31].mxu1  ;;  %v1732_v27 = vmul.f32 -1.442695, %v1264_v16 }
0x22d1   :  { %2008 = vpow2.f32 %v1732_v27 }
0x22d9   :  { %v2007_v26 = vpop.eup %2006 }
0x22da   :  { %1274 = vrot.lane.b32.xlu0 %v2007_v26, %s2077_s4 }
0x22db   :  { %v2009_v24 = vpop.eup %2008 }
0x22dc   :  { %v1268_v28 = vadd.f32 1.0, %v2009_v24 }
0x22de   :  { %2010 = vrcp.f32 %v1268_v28 }
0x22e8   :  { %v2011_v29 = vpop.eup %2010 }
0x22e9   :  { %v1272_v25 = vmul.f32 %v2011_v29, %v2464_v45 }
0x234c   :  { %v1275_v30 = vpop.permute.xlu0 %1274 }
0x234d   :  { %v1277_v23 = vmul.f32 %v2011_v29, %v1275_v30 }
0x234f   :  { %1279 = vrot.lane.b32.xlu1 %v1277_v23, %s2078_s27  ;;  %v2074_v23 = vld [vmem:[%s2616_s8] ss:$0 sm:$0xff] }
0x23c1   :  { %v1280_v1 = vpop.permute.xlu1 %1279 }
0x23c2   :  { %v2513_v33 = vadd.f32 %v1280_v1, %v1272_v25 }
0x23c4   :  { %2012 = vtanh.f32 %v2513_v33 }
0x23ce   :  { %v2013_v34 = vpop.eup %2012 }
0x23cf   :  { %1285 = vrot.lane.b32.xlu0 %v2013_v34, %s2077_s4 }
0x2441   :  { %v1286_v36 = vpop.permute.xlu0 %1285 }
0x2442   :  { %v1288_v37 = vmul.f32 %v2011_v29, %v1286_v36 }
0x2444   :  { %v1289_v35 = vpack.c.bf16 %v1288_v37, %v1288_v37 }
0x2446   :  { %1291 = vrot.lane.b32.xlu1 %v1289_v35, %s2078_s27 }
0x24b8   :  { %v1292_v39 = vpop.permute.xlu1 %1291 }
0x24b9   :  { %1870 = vmatmul.mubr.msk.bf16.vlgmr.msra.gmra.mrb[36].mxu0 %vm179_vm1, %v1292_v39 }
0x24ba   :  { %1375 = vmatpush1.bf16.msra.mxu0 %v2473_v52  ;;  %1406 = vmatprep.mubr.bf16.mxu0 %v2075_v10 }
0x24bb   :  { %1376 = vmatprep.subr.bf16.mxu0 %v2075_v10 }
0x24be   :  { %1377 = vmatpush1.bf16.msra.mxu0 %v2481_v3 }
0x24bf   :  { %1378 = vmatprep.subr.bf16.mxu0 %v2072_v40 }
0x24c2   :  { %1379 = vmatpush1.bf16.msra.mxu0 %v2075_v10 }
0x24c3   :  { %1380 = vmatprep.subr.bf16.mxu0 %v2073_v42  ;;  %v1512_v42 = vpack.c.bf16 %v2328_v44, %v2288_v50 }
0x24c6   :  { %1381 = vmatpush1.bf16.msra.mxu0 %v2075_v10 }
0x258c   :  { %v1330_v43 = vpop.f32.mrb[36].mxu0 }
0x258d   :  { %v1331_v41 = vadd.f32 %v1330_v43, %v1259_v18  ;;  %v1871_v8 = vpop.f32.mrb[37].mxu0  ;;  %v1908_v43 = vld [vmem:[%s2617_s9] sm:$0xff]  }
0x258e   :  { %v1333_v45 = vpop.f32.mrb[38].mxu0  ;;  %1881 = vmatprep.subr.bf16.mxu1 %v1908_v43 }
0x258f   :  { %v1336_v46 = vadd.f32 %v2277_v31, %v1331_v41  ;;  %v1872_v48 = vpop.f32.mrb[39].mxu0  ;;  %v1514_v41 = vpack.c.bf16 %v2498_v9, %v2448_v20  ;;  %v1909_v45 = vld [vmem:[%s2617_s9 + $0x8] sm:$0xff]   ;;  %v1513_v20 = vpack.c.bf16 %v2408_v32, %v2368_v38  ;;  %v1739_v38 = vld [vmem:[%s2618_s10] ss:$0 sm:$0xff] }
0x2591   :  { %2014 = vtanh.f32 %v1336_v46  ;;  %v1734_v47 = vmul.f32 -1.442695, %v1336_v46 }
0x2593   :  { %2016 = vpow2.f32 %v1734_v47 }
0x259b   :  { %v2015_v49 = vpop.eup %2014 }
0x259c   :  { %1346 = vrot.lane.b32.xlu0 %v2015_v49, %s2077_s4 }
0x259d   :  { %v2017_v51 = vpop.eup %2016 }
0x259e   :  { %v1340_v52 = vadd.f32 1.0, %v2017_v51 }
0x25a0   :  { %2018 = vrcp.f32 %v1340_v52 }
0x25aa   :  { %v2019_v3 = vpop.eup %2018 }
0x25ab   :  { %v1344_v10 = vmul.f32 %v2019_v3, %v2494_v15 }
0x260e   :  { %v1347_v53 = vpop.permute.xlu0 %1346 }
0x260f   :  { %v1349_v54 = vmul.f32 %v2019_v3, %v1347_v53 }
0x2611   :  { %1351 = vrot.lane.b32.xlu1 %v1349_v54, %s2078_s27 }
0x2615   :  { %1362 = vrot.lane.b32.xlu1 %v1288_v37, %s2078_s27 }
0x2683   :  { %v1352_v31 = vpop.permute.xlu1 %1351 }
0x2684   :  { %v2536_v55 = vadd.f32 %v1352_v31, %v1344_v10 }
0x2686   :  { %2020 = vtanh.f32 %v2536_v55 }
0x2687   :  { %v1363_v59 = vpop.permute.xlu1 %1362 }
0x2690   :  { %v2021_v57 = vpop.eup %2020 }
0x2691   :  { %1357 = vrot.lane.b32.xlu0 %v2021_v57, %s2077_s4 }
0x2703   :  { %v1358_v58 = vpop.permute.xlu0 %1357 }
0x2704   :  { %v2540_v60 = vmul.f32 %v2019_v3, %v1358_v58 }
0x2706   :  { %1366 = vrot.lane.b32.xlu0 %v2540_v60, %s2077_s4 }
0x2778   :  { %v1367_v17 = vpop.permute.xlu0 %1366 }
0x2779   :  { %v1369_v61 = vsel %vm179_vm1, %v1363_v59, %v1367_v17 }
0x277a   :  { %v1370_v62 = vpack.c.bf16 %v1369_v61, %v1369_v61 }
0x277c   :  { %1735 = vmatmul.mubr.msk.bf16.vlgmr.msra.gmra.mrb[40].mxu0 %vm295_vm3, %v1370_v62 }
0x284f   :  { %v1408_v19 = vpop.f32.mrb[40].mxu0 }
0x2850   :  { %v1415_v7 = vadd.f32 %v1408_v19, %v2229_v5  ;;  %v1410_v0 = vpop.f32.mrb[41].mxu0 }
0x2851   :  { %v1412_v2 = vpop.f32.mrb[42].mxu0 }
0x2852   :  { %2022 = vtanh.f32 %v1415_v7  ;;  %v1413_v56 = vpop.f32.mrb[43].mxu0  ;;  %v1736_v4 = vmul.f32 -1.442695, %v1415_v7 }
0x2854   :  { %2024 = vpow2.f32 %v1736_v4 }
0x285c   :  { %v2023_v15 = vpop.eup %2022 }
0x285d   :  { %1425 = vrot.lane.b32.xlu1 %v2023_v15, %s2077_s4 }
0x285e   :  { %v2025_v6 = vpop.eup %2024 }
0x285f   :  { %v1419_v11 = vadd.f32 1.0, %v2025_v6 }
0x2861   :  { %2026 = vrcp.f32 %v1419_v11 }
0x286b   :  { %v2027_v12 = vpop.eup %2026 }
0x286c   :  { %v1423_v14 = vmul.f32 %v2027_v12, %v2513_v33 }
0x28cf   :  { %v1426_v63 = vpop.permute.xlu1 %1425 }
0x28d0   :  { %v1428_v13 = vmul.f32 %v2027_v12, %v1426_v63 }
0x28d2   :  { %1430 = vrot.lane.b32.xlu0 %v1428_v13, %s2078_s27 }
0x2944   :  { %v1431_v5 = vpop.permute.xlu0 %1430 }
0x2945   :  { %v1433_v16 = vadd.f32 %v1431_v5, %v1423_v14 }
0x2947   :  { %2028 = vtanh.f32 %v1433_v16 }
0x2951   :  { %v2029_v18 = vpop.eup %2028 }
0x2952   :  { %1436 = vrot.lane.b32.xlu1 %v2029_v18, %s2077_s4 }
0x29c4   :  { %v1437_v21 = vpop.permute.xlu1 %1436 }
0x29c5   :  { %v1439_v22 = vmul.f32 %v2027_v12, %v1437_v21 }
0x29c7   :  { %v1440_v26 = vpack.c.bf16 %v1439_v22, %v1439_v22 }
0x29c9   :  { %1442 = vrot.lane.b32.xlu0 %v1440_v26, %s2078_s27 }
0x2a3b   :  { %v1443_v27 = vpop.permute.xlu0 %1442 }
0x2a3c   :  { %1878 = vmatmul.mubr.msk.bf16.vlgmr.msra.gmra.mrb[32].mxu1 %vm179_vm1, %v1443_v27 }
0x2a3d   :  { %1882 = vmatpush3.bf16.msra.mxu1 %v1908_v43 }
0x2a3e   :  { %1883 = vmatprep.subr.bf16.mxu1 %v1909_v45 }
0x2a41   :  { %1884 = vmatpush3.bf16.msra.mxu1 %v1909_v45 }
0x2b0f   :  { %v1481_v24 = vpop.f32.mrb[32].mxu1 }
0x2b10   :  { %v1482_v28 = vadd.f32 %v1481_v24, %v1410_v0  ;;  %v1879_v29 = vpop.f32.mrb[33].mxu1 }
0x2b11   :  { %v1484_v30 = vpop.f32.mrb[34].mxu1 }
0x2b12   :  { %v1487_v25 = vadd.f32 %v2074_v23, %v1482_v28  ;;  %v1880_v1 = vpop.f32.mrb[35].mxu1 }
0x2b14   :  { %2030 = vtanh.f32 %v1487_v25  ;;  %v1738_v34 = vmul.f32 -1.442695, %v1487_v25 }
0x2b16   :  { %2032 = vpow2.f32 %v1738_v34 }
0x2b1e   :  { %v2031_v33 = vpop.eup %2030 }
0x2b1f   :  { %1497 = vrot.lane.b32.xlu1 %v2031_v33, %s2077_s4 }
0x2b20   :  { %v2033_v36 = vpop.eup %2032 }
0x2b21   :  { %v1491_v37 = vadd.f32 1.0, %v2033_v36 }
0x2b23   :  { %2034 = vrcp.f32 %v1491_v37 }
0x2b2d   :  { %v2035_v35 = vpop.eup %2034 }
0x2b2e   :  { %v1495_v8 = vmul.f32 %v2035_v35, %v2536_v55 }
0x2b91   :  { %v1498_v39 = vpop.permute.xlu1 %1497 }
0x2b92   :  { %v1500_v40 = vmul.f32 %v2035_v35, %v1498_v39 }
0x2b94   :  { %1502 = vrot.lane.b32.xlu0 %v1500_v40, %s2078_s27 }
0x2b98   :  { %1531 = vrot.lane.b32.xlu0 %v1512_v42, %s2078_s27 }
0x2b9c   :  { %1535 = vrot.lane.b32.xlu0 %v1514_v41, %s2078_s27 }
0x2c06   :  { %v1503_v50 = vpop.permute.xlu0 %1502 }
0x2c07   :  { %v1505_v44 = vadd.f32 %v1503_v50, %v1495_v8 }
0x2c09   :  { %2036 = vtanh.f32 %v1505_v44 }
0x2c0a   :  { %v1532_v46 = vpop.permute.xlu0 %1531 }
0x2c0b   :  { %1885 = vmatprep.mubr.msk.bf16.mxu1 %vm179_vm1, %v1532_v46 }
0x2c0e   :  { %v1536_v52 = vpop.permute.xlu0 %1535 }
0x2c13   :  { %v2037_v48 = vpop.eup %2036 }
0x2c14   :  { %1508 = vrot.lane.b32.xlu1 %v2037_v48, %s2077_s4 }
0x2c18   :  { %1533 = vrot.lane.b32.xlu1 %v1513_v20, %s2078_s27 }
0x2c86   :  { %v1509_v9 = vpop.permute.xlu1 %1508 }
0x2c87   :  { %v1511_v49 = vmul.f32 %v2035_v35, %v1509_v9 }
0x2c89   :  { %v1515_v47 = vpack.c.bf16 %v1511_v49, %v2540_v60 }
0x2c8a   :  { %v1534_v51 = vpop.permute.xlu1 %1533 }
0x2c8b   :  { %1537 = vrot.lane.b32.xlu1 %v1515_v47, %s2078_s27  ;;  %1886 = vmatmul.mubr.msk.bf16.vlgmr.msra.gmra.mrb[36].mxu1 %vm179_vm1, %v1534_v51 }
0x2c8c   :  { %1889 = vmatprep.mubr.msk.bf16.mxu1 %vm179_vm1, %v1536_v52 }
0x2cfd   :  { %v1538_v3 = vpop.permute.xlu1 %1537 }
0x2cfe   :  { %1890 = vmatmul.mubr.msk.bf16.gmra.mrb[40].mxu1 %vm179_vm1, %v1538_v3 }
0x2d5e   :  { %v1887_v32 = vpop.f32.mrb[36].mxu1 }
0x2d5f   :  { %v1606_v53 = vadd.f32 %v1887_v32, %v1739_v38  ;;  %v1597_v54 = vpop.f32.mrb[37].mxu1 }
0x2d60   :  { %v1598_v10 = vadd.f32 %v1739_v38, %v1597_v54  ;;  %v1888_v31 = vpop.f32.mrb[38].mxu1 }
0x2d61   :  { %v1748_v55 = vmul.f32 -1.442695, %v1606_v53  ;;  %v1609_v57 = vadd.f32 %v1888_v31, %v1739_v38  ;;  %v1600_v58 = vpop.f32.mrb[39].mxu1 }
0x2d62   :  { %v1746_v60 = vmul.f32 -1.442695, %v1598_v10  ;;  %v1601_v59 = vadd.f32 %v1739_v38, %v1600_v58 }
0x2d63   :  { %2038 = vpow2.f32 %v1748_v55  ;;  %v1749_v17 = vmul.f32 -1.442695, %v1609_v57 }
0x2d64   :  { %2040 = vpow2.f32 %v1746_v60  ;;  %v1747_v61 = vmul.f32 -1.442695, %v1601_v59 }
0x2d65   :  { %2042 = vpow2.f32 %v1749_v17 }
0x2d66   :  { %2044 = vpow2.f32 %v1747_v61 }
0x2d6d   :  { %v2039_v62 = vpop.eup %2038 }
0x2d6e   :  { %v2041_v19 = vpop.eup %2040  ;;  %v1654_v7 = vadd.f32 1.0, %v2039_v62 }
0x2d6f   :  { %v2043_v0 = vpop.eup %2042  ;;  %v1652_v2 = vadd.f32 1.0, %v2041_v19 }
0x2d70   :  { %v2045_v56 = vpop.eup %2044  ;;  %2046 = vrcp.f32 %v1654_v7  ;;  %v1655_v15 = vadd.f32 1.0, %v2043_v0 }
0x2d71   :  { %2048 = vrcp.f32 %v1652_v2  ;;  %v1653_v4 = vadd.f32 1.0, %v2045_v56 }
0x2d72   :  { %2050 = vrcp.f32 %v1655_v15 }
0x2d73   :  { %2052 = vrcp.f32 %v1653_v4 }
0x2d7a   :  { %v2047_v6 = vpop.eup %2046 }
0x2d7b   :  { %v2049_v11 = vpop.eup %2048  ;;  %1678 = vst [vmem:[%s2619_s11 + $0x10] sm:$0xff] %v2047_v6 }
0x2d7c   :  { %v2051_v12 = vpop.eup %2050  ;;  %1676 = vst [vmem:[%s2619_s11] sm:$0xff] %v2049_v11 }
0x2d7d   :  { %v2053_v63 = vpop.eup %2052  ;;  %1679 = vst [vmem:[%s2619_s11 + $0x18] sm:$0xff] %v2051_v12 }
0x2d7e   :  { %1677 = vst [vmem:[%s2619_s11 + $0x8] sm:$0xff] %v2053_v63 }
0x2dd1   :  { %v1891_v13 = vpop.f32.mrb[40].mxu1 }
0x2dd2   :  { %v1622_v14 = vadd.f32 %v1891_v13, %v1739_v38  ;;  %v1613_v5 = vpop.f32.mrb[41].mxu1 }
0x2dd3   :  { %v1614_v16 = vadd.f32 %v1739_v38, %v1613_v5  ;;  %v1892_v18 = vpop.f32.mrb[42].mxu1 }
0x2dd4   :  { %v1752_v21 = vmul.f32 -1.442695, %v1622_v14  ;;  %v1625_v22 = vadd.f32 %v1892_v18, %v1739_v38  ;;  %v1616_v26 = vpop.f32.mrb[43].mxu1 }
0x2dd5   :  { %v1750_v27 = vmul.f32 -1.442695, %v1614_v16  ;;  %v1617_v24 = vadd.f32 %v1739_v38, %v1616_v26 }
0x2dd6   :  { %2054 = vpow2.f32 %v1752_v21  ;;  %v1753_v28 = vmul.f32 -1.442695, %v1625_v22 }
0x2dd7   :  { %2056 = vpow2.f32 %v1750_v27  ;;  %v1751_v29 = vmul.f32 -1.442695, %v1617_v24 }
0x2dd8   :  { %2058 = vpow2.f32 %v1753_v28 }
0x2dd9   :  { %2060 = vpow2.f32 %v1751_v29 }
0x2de0   :  { %v2055_v30 = vpop.eup %2054 }
0x2de1   :  { %v2057_v23 = vpop.eup %2056  ;;  %v1658_v25 = vadd.f32 1.0, %v2055_v30 }
0x2de2   :  { %v2059_v1 = vpop.eup %2058  ;;  %v1656_v33 = vadd.f32 1.0, %v2057_v23 }
0x2de3   :  { %v2061_v34 = vpop.eup %2060  ;;  %2062 = vrcp.f32 %v1658_v25  ;;  %v1659_v36 = vadd.f32 1.0, %v2059_v1 }
0x2de4   :  { %2064 = vrcp.f32 %v1656_v33  ;;  %v1657_v37 = vadd.f32 1.0, %v2061_v34 }
0x2de5   :  { %2066 = vrcp.f32 %v1659_v36 }
0x2de6   :  { %2068 = vrcp.f32 %v1657_v37 }
0x2ded   :  { %v2063_v35 = vpop.eup %2062 }
0x2dee   :  { %v2065_v39 = vpop.eup %2064  ;;  %1682 = vst [vmem:[%s2619_s11 + $0x30] sm:$0xff] %v2063_v35 }
0x2def   :  { %v2067_v40 = vpop.eup %2066  ;;  %1680 = vst [vmem:[%s2619_s11 + $0x20] sm:$0xff] %v2065_v39 }
0x2df0   :  { %v2069_v42 = vpop.eup %2068  ;;  %1683 = vst [vmem:[%s2619_s11 + $0x38] sm:$0xff] %v2067_v40 }
0x2df1   :  { %1681 = vst [vmem:[%s2619_s11 + $0x28] sm:$0xff] %v2069_v42 }

</bundles_post_ra>
